<compile_context>
chip_gen: v6e
topology: v6e:2x2x1
jax: 0.10.0
libtpu: 0.0.40
codegen_flags: <defaults>
</compile_context>

<pallas_src>
import functools

import jax
import jax.numpy as jnp
from jax import lax
from jax.experimental import pallas as pl
from jax.experimental.pallas import tpu as pltpu


def _round_up(a, m):
    return ((a + m - 1) // m) * m


# ---------------------------------------------------------------------------
# Fused kernel: maxpool-query + MHA (q-len = 1) + residual + LayerNorm
# ---------------------------------------------------------------------------
def _stage_reduction_att_kernel(x_ref, m_ref, posk_ref, wq_ref, wkv_ref, bkv_ref,
                                wo_ref, pvec_ref, es_ref, ee_ref, o_ref, *, eps):
    TB, P, C = x_ref.shape          # batch tile, pool_volume, channels
    H = es_ref.shape[1]             # num heads

    x3 = x_ref[...]                                   # (TB, P, C) channels-last
    xf = x3.reshape(TB * P, C)

    # ---- fused K/V projection: one (TB*P, C) @ (C, 2C) matmul ----------------
    kv = jnp.dot(xf, wkv_ref[...], preferred_element_type=jnp.float32) + bkv_ref[...]
    k3 = kv[:, :C].reshape(TB, P, C) + posk_ref[...][None, :, :]   # + (pos @ Wk^T)
    v = kv[:, C:]                                      # (TB*P, C)

    # ---- query: max-pool over P (MaxPool1d(pool_volume)), pre-scaled Q proj --
    src = jnp.max(x3, axis=1)                          # (TB, C)
    q = jnp.dot(src, wq_ref[...], preferred_element_type=jnp.float32) + pvec_ref[0:1, :]

    # ---- per-head scores without per-head loops / lane reshapes --------------
    # scores[b,p,h] = sum_{c in head h} q[b,c] * k[b,p,c]
    prod = (k3 * q[:, None, :]).reshape(TB * P, C)
    scores = jnp.dot(prod, es_ref[...], preferred_element_type=jnp.float32)  # (TB*P, H)
    s3 = scores.reshape(TB, P, H) + m_ref[...]         # additive key-padding bias

    # ---- softmax over keys (axis=1), EUP reciprocal for the denominator ------
    s3 = s3 - jnp.max(s3, axis=1, keepdims=True)
    pexp = jnp.exp(s3)
    denom = jnp.sum(pexp, axis=1, keepdims=True)       # (TB, 1, H)
    r = pl.reciprocal(denom, approx=True)
    r = r * (2.0 - denom * r)                          # one Newton step -> ~f32 exact
    pn = (pexp * r).reshape(TB * P, H)

    # ---- context: expand head weights back to channels, weight V, reduce -----
    wexp = jnp.dot(pn, ee_ref[...], preferred_element_type=jnp.float32)      # (TB*P, C)
    ctx = jnp.sum((wexp * v).reshape(TB, P, C), axis=1)                      # (TB, C)

    # ---- output projection + residual + LayerNorm -----------------------------
    attn = jnp.dot(ctx, wo_ref[...], preferred_element_type=jnp.float32) + pvec_ref[1:2, :]
    y = attn + src
    mu = jnp.mean(y, axis=-1, keepdims=True)
    yc = y - mu
    var = jnp.mean(yc * yc, axis=-1, keepdims=True)
    o_ref[...] = (yc * lax.rsqrt(var + eps) * pvec_ref[2:3, :]
                  + pvec_ref[3:4, :]).astype(o_ref.dtype)


# ---------------------------------------------------------------------------
# Wrapper: layout prep, weight pre-transposition, tiling, padding
# ---------------------------------------------------------------------------
def stage_reduction_att_block(x, key_padding_mask, params, *, nhead=8, eps=1e-5, tb=None):
    """x: (B, C, P) with P == pool_volume; key_padding_mask: (B, P) bool (True = ignore)."""
    B, C, P = x.shape
    assert C % nhead == 0, "input_channel must be divisible by nhead"
    dh = C // nhead
    f32 = jnp.float32

    # channels-last (C on the lane axis); mask -> additive bias shaped (B, P, 1)
    x_perm = jnp.transpose(x, (0, 2, 1)).astype(f32)                       # (B, P, C)
    mask_bias = jnp.where(key_padding_mask, -1e9, 0.0).astype(f32)[:, :, None]

    in_w = params['in_w'].astype(f32)
    in_b = params['in_b'].astype(f32)
    wq, wk, wv = in_w[:C], in_w[C:2 * C], in_w[2 * C:]
    bq, bk, bv = in_b[:C], in_b[C:2 * C], in_b[2 * C:]
    scale = 1.0 / (float(dh) ** 0.5)

    # hoisted, one-time weight prep (no in-kernel transposes)
    wq_t = (wq * scale).T                                                   # (C, C)
    wkv_t = jnp.concatenate([wk.T, wv.T], axis=1)                           # (C, 2C)
    bkv = jnp.concatenate([bk, bv]).reshape(1, 2 * C)
    pos_k = jnp.dot(params['pos'].astype(f32), wk.T)                        # (P, C)
    wo_t = params['out_w'].astype(f32).T                                    # (C, C)
    pvec = jnp.stack([bq * scale, params['out_b'].astype(f32),
                      params['gamma'].astype(f32),
                      params['beta'].astype(f32)], axis=0)                  # (4, C)

    head_of = jnp.arange(C, dtype=jnp.int32) // dh
    e_sum = (head_of[:, None] == jnp.arange(nhead, dtype=jnp.int32)[None, :]).astype(f32)
    e_exp = e_sum.T                                                         # (H, C)

    # batch tile: multiple of 8 sublanes, target ~1024 rows for the fused K/V matmul
    if tb is None:
        tb = max(8, min(256, (1024 // max(P, 1)) // 8 * 8))
    tb = min(tb, _round_up(B, 8))
    b_pad = _round_up(B, tb)
    if b_pad != B:   # padded rows are fully independent and sliced off below
        x_perm = jnp.pad(x_perm, ((0, b_pad - B), (0, 0), (0, 0)))
        mask_bias = jnp.pad(mask_bias, ((0, b_pad - B), (0, 0), (0, 0)))

    kernel = functools.partial(_stage_reduction_att_kernel, eps=eps)
    out = pl.pallas_call(
        kernel,
        out_shape=jax.ShapeDtypeStruct((b_pad, C), f32),
        grid=(b_pad // tb,),
        in_specs=[
            pl.BlockSpec((tb, P, C), lambda i: (i, 0, 0)),   # x (channels-last)
            pl.BlockSpec((tb, P, 1), lambda i: (i, 0, 0)),   # key-padding additive bias
            pl.BlockSpec((P, C), lambda i: (0, 0)),          # pos @ Wk^T
            pl.BlockSpec((C, C), lambda i: (0, 0)),          # Wq^T (pre-scaled)
            pl.BlockSpec((C, 2 * C), lambda i: (0, 0)),      # [Wk^T | Wv^T]
            pl.BlockSpec((1, 2 * C), lambda i: (0, 0)),      # [bk | bv]
            pl.BlockSpec((C, C), lambda i: (0, 0)),          # Wo^T
            pl.BlockSpec((4, C), lambda i: (0, 0)),          # packed [bq*scale, bo, gamma, beta]
            pl.BlockSpec((C, nhead), lambda i: (0, 0)),      # head-sum matrix
            pl.BlockSpec((nhead, C), lambda i: (0, 0)),      # head-expand matrix
        ],
        out_specs=pl.BlockSpec((tb, C), lambda i: (i, 0)),
        compiler_params=pltpu.CompilerParams(dimension_semantics=("parallel",)),
    )(x_perm, mask_bias, pos_k, wq_t, wkv_t, bkv, wo_t, pvec, e_sum, e_exp)
    return out[:B]


# ---------------------------------------------------------------------------
# Pure-JAX reference (mirrors the PyTorch module) for a sanity check
# ---------------------------------------------------------------------------
def _reference(x, mask, params, nhead, eps=1e-5):
    B, C, P = x.shape
    dh = C // nhead
    xp = jnp.transpose(x, (0, 2, 1))                    # (B, P, C)
    src = jnp.max(xp, axis=1)                           # (B, C)   MaxPool1d(P)
    wq, wk, wv = params['in_w'][:C], params['in_w'][C:2 * C], params['in_w'][2 * C:]
    bq, bk, bv = params['in_b'][:C], params['in_b'][C:2 * C], params['in_b'][2 * C:]
    q = (src @ wq.T + bq) / (float(dh) ** 0.5)
    k = (xp + params['pos'][None]) @ wk.T + bk
    v = xp @ wv.T + bv
    qh = q.reshape(B, nhead, dh)
    kh = k.reshape(B, P, nhead, dh)
    vh = v.reshape(B, P, nhead, dh)
    s = jnp.einsum('bhd,bphd->bhp', qh, kh) + jnp.where(mask, -1e9, 0.0)[:, None, :]
    p = jax.nn.softmax(s, axis=-1)
    ctx = jnp.einsum('bhp,bphd->bhd', p, vh).reshape(B, C)
    attn = ctx @ params['out_w'].T + params['out_b']
    y = attn + src
    mu = y.mean(-1, keepdims=True)
    var = ((y - mu) ** 2).mean(-1, keepdims=True)
    return (y - mu) / jnp.sqrt(var + eps) * params['gamma'] + params['beta']


if __name__ == "__main__":
    # small shapes consistent with the module (input_channel divisible by 8 heads)
    B, C, P, H = 16, 32, 16, 8          # batch, input_channel, pool_volume, nhead

    key = jax.random.PRNGKey(0)
    ks = jax.random.split(key, 8)

    x = jax.random.normal(ks[0], (B, C, P), jnp.float32)
    # key_padding_mask: True => ignore key; keep at least one valid key per row
    mask = jax.random.bernoulli(ks[1], 0.2, (B, P))
    mask = mask.at[:, 0].set(False)

    params = {
        'in_w':  jax.random.normal(ks[2], (3 * C, C), jnp.float32) * 0.05,
        'in_b':  jax.random.normal(ks[3], (3 * C,), jnp.float32) * 0.02,
        'out_w': jax.random.normal(ks[4], (C, C), jnp.float32) * 0.05,
        'out_b': jax.random.normal(ks[5], (C,), jnp.float32) * 0.02,
        'pos':   jax.random.normal(ks[6], (P, C), jnp.float32) * 0.01,
        'gamma': jnp.ones((C,), jnp.float32),
        'beta':  jnp.zeros((C,), jnp.float32),
    }

    out = stage_reduction_att_block(x, mask, params, nhead=H)
    out = jax.block_until_ready(out)

    assert out.shape == (B, C) and out.dtype == jnp.float32
    assert bool(jnp.all(jnp.isfinite(out)))

    ref = _reference(x, mask, params, H)
    max_err = float(jnp.max(jnp.abs(out - ref)))
    assert max_err < 5e-2, f"mismatch vs reference: {max_err}"

    print("KERNEL_OK")
</pallas_src>

<mosaic_0001>
module attributes {stable_mosaic.version = 11 : i64} {
  func.func @_stage_reduction_att_kernel(%arg0: i32, %arg1: memref<16x16x32xf32, #tpu.memory_space<vmem>>, %arg2: memref<16x16x1xf32, #tpu.memory_space<vmem>>, %arg3: memref<16x32xf32, #tpu.memory_space<vmem>>, %arg4: memref<32x32xf32, #tpu.memory_space<vmem>>, %arg5: memref<32x64xf32, #tpu.memory_space<vmem>>, %arg6: memref<1x64xf32, #tpu.memory_space<vmem>>, %arg7: memref<32x32xf32, #tpu.memory_space<vmem>>, %arg8: memref<4x32xf32, #tpu.memory_space<vmem>>, %arg9: memref<32x8xf32, #tpu.memory_space<vmem>>, %arg10: memref<8x32xf32, #tpu.memory_space<vmem>>, %arg11: memref<16x32xf32, #tpu.memory_space<vmem>>) attributes {dimension_semantics = [#tpu.dimension_semantics<parallel>], iteration_bounds = array<i64: 1>, scalar_prefetch = 0 : i64, scratch_operands = 0 : i64, tpu.core_type = #tpu.core_type<tc>, window_params = [{transform_indices = @transform_0, window_bounds = array<i64: 16, 16, 32>}, {transform_indices = @transform_1, window_bounds = array<i64: 16, 16, 1>}, {pipeline_mode = #tpu.pipeline_mode<synchronous>, transform_indices = @transform_2, window_bounds = array<i64: 16, 32>}, {pipeline_mode = #tpu.pipeline_mode<synchronous>, transform_indices = @transform_3, window_bounds = array<i64: 32, 32>}, {pipeline_mode = #tpu.pipeline_mode<synchronous>, transform_indices = @transform_4, window_bounds = array<i64: 32, 64>}, {pipeline_mode = #tpu.pipeline_mode<synchronous>, transform_indices = @transform_5, window_bounds = array<i64: 1, 64>}, {pipeline_mode = #tpu.pipeline_mode<synchronous>, transform_indices = @transform_6, window_bounds = array<i64: 32, 32>}, {pipeline_mode = #tpu.pipeline_mode<synchronous>, transform_indices = @transform_7, window_bounds = array<i64: 4, 32>}, {pipeline_mode = #tpu.pipeline_mode<synchronous>, transform_indices = @transform_8, window_bounds = array<i64: 32, 8>}, {pipeline_mode = #tpu.pipeline_mode<synchronous>, transform_indices = @transform_9, window_bounds = array<i64: 8, 32>}, {transform_indices = @transform_10, window_bounds = array<i64: 16, 32>}]} {
    %c0 = arith.constant 0 : index
    %c0_0 = arith.constant 0 : index
    %c0_1 = arith.constant 0 : index
    %0 = vector.load %arg1[%c0, %c0_0, %c0_1] : memref<16x16x32xf32, #tpu.memory_space<vmem>>, vector<16x16x32xf32>
    %1 = vector.shape_cast %0 : vector<16x16x32xf32> to vector<256x32xf32>
    %c0_2 = arith.constant 0 : index
    %c0_3 = arith.constant 0 : index
    %2 = vector.load %arg5[%c0_2, %c0_3] : memref<32x64xf32, #tpu.memory_space<vmem>>, vector<32x64xf32>
    %cst = arith.constant dense<0.000000e+00> : vector<256x64xf32>
    %3 = tpu.matmul %1, %2, %cst {dimension_numbers = #tpu.dot_dimension_numbers<[1], [0], [0], [1], [0, 0, 1, 1], [], []>} : vector<256x32xf32>, vector<32x64xf32>, vector<256x64xf32> -> vector<256x64xf32>
    %c0_4 = arith.constant 0 : index
    %c0_5 = arith.constant 0 : index
    %4 = vector.load %arg6[%c0_4, %c0_5] : memref<1x64xf32, #tpu.memory_space<vmem>>, vector<1x64xf32>
    %5 = vector.broadcast %4 : vector<1x64xf32> to vector<256x64xf32>
    %6 = arith.addf %3, %5 : vector<256x64xf32>
    %7 = vector.extract_strided_slice %6 {offsets = [0, 0], sizes = [256, 32], strides = [1, 1]} : vector<256x64xf32> to vector<256x32xf32>
    %8 = vector.shape_cast %7 : vector<256x32xf32> to vector<16x16x32xf32>
    %c0_6 = arith.constant 0 : index
    %c0_7 = arith.constant 0 : index
    %9 = vector.load %arg3[%c0_6, %c0_7] : memref<16x32xf32, #tpu.memory_space<vmem>>, vector<16x32xf32>
    %10 = vector.shape_cast %9 : vector<16x32xf32> to vector<1x16x32xf32>
    %11 = vector.broadcast %10 : vector<1x16x32xf32> to vector<16x16x32xf32>
    %12 = arith.addf %8, %11 : vector<16x16x32xf32>
    %13 = vector.extract_strided_slice %6 {offsets = [0, 32], sizes = [256, 32], strides = [1, 1]} : vector<256x64xf32> to vector<256x32xf32>
    %cst_8 = arith.constant dense<0xFF800000> : vector<16x32xf32>
    %14 = vector.multi_reduction <maximumf>, %0, %cst_8 [1] : vector<16x16x32xf32> to vector<16x32xf32>
    %c0_9 = arith.constant 0 : index
    %c0_10 = arith.constant 0 : index
    %15 = vector.load %arg4[%c0_9, %c0_10] : memref<32x32xf32, #tpu.memory_space<vmem>>, vector<32x32xf32>
    %cst_11 = arith.constant dense<0.000000e+00> : vector<16x32xf32>
    %16 = tpu.matmul %14, %15, %cst_11 {dimension_numbers = #tpu.dot_dimension_numbers<[1], [0], [0], [1], [0, 0, 1, 1], [], []>} : vector<16x32xf32>, vector<32x32xf32>, vector<16x32xf32> -> vector<16x32xf32>
    %c0_12 = arith.constant 0 : index
    %c0_13 = arith.constant 0 : index
    %17 = vector.load %arg8[%c0_12, %c0_13] : memref<4x32xf32, #tpu.memory_space<vmem>>, vector<1x32xf32>
    %18 = vector.broadcast %17 : vector<1x32xf32> to vector<16x32xf32>
    %19 = arith.addf %16, %18 : vector<16x32xf32>
    %20 = vector.shape_cast %19 : vector<16x32xf32> to vector<16x1x32xf32>
    %21 = vector.broadcast %20 : vector<16x1x32xf32> to vector<16x16x32xf32>
    %22 = arith.mulf %12, %21 : vector<16x16x32xf32>
    %23 = vector.shape_cast %22 : vector<16x16x32xf32> to vector<256x32xf32>
    %c0_14 = arith.constant 0 : index
    %c0_15 = arith.constant 0 : index
    %24 = vector.load %arg9[%c0_14, %c0_15] : memref<32x8xf32, #tpu.memory_space<vmem>>, vector<32x8xf32>
    %cst_16 = arith.constant dense<0.000000e+00> : vector<256x8xf32>
    %25 = tpu.matmul %23, %24, %cst_16 {dimension_numbers = #tpu.dot_dimension_numbers<[1], [0], [0], [1], [0, 0, 1, 1], [], []>} : vector<256x32xf32>, vector<32x8xf32>, vector<256x8xf32> -> vector<256x8xf32>
    %26 = vector.shape_cast %25 : vector<256x8xf32> to vector<16x16x8xf32>
    %c0_17 = arith.constant 0 : index
    %c0_18 = arith.constant 0 : index
    %c0_19 = arith.constant 0 : index
    %27 = vector.load %arg2[%c0_17, %c0_18, %c0_19] : memref<16x16x1xf32, #tpu.memory_space<vmem>>, vector<16x16x1xf32>
    %28 = vector.broadcast %27 : vector<16x16x1xf32> to vector<16x16x8xf32>
    %29 = arith.addf %26, %28 : vector<16x16x8xf32>
    %cst_20 = arith.constant dense<0xFF800000> : vector<16x8xf32>
    %30 = vector.multi_reduction <maximumf>, %29, %cst_20 [1] : vector<16x16x8xf32> to vector<16x8xf32>
    %31 = vector.shape_cast %30 : vector<16x8xf32> to vector<16x1x8xf32>
    %32 = vector.broadcast %31 : vector<16x1x8xf32> to vector<16x16x8xf32>
    %33 = arith.subf %29, %32 : vector<16x16x8xf32>
    %34 = math.exp %33 : vector<16x16x8xf32>
    %cst_21 = arith.constant dense<0.000000e+00> : vector<16x8xf32>
    %35 = vector.multi_reduction <add>, %34, %cst_21 [1] : vector<16x16x8xf32> to vector<16x8xf32>
    %36 = vector.shape_cast %35 : vector<16x8xf32> to vector<16x1x8xf32>
    %37 = tpu.reciprocal %36 {approx = true} : vector<16x1x8xf32> -> vector<16x1x8xf32>
    %38 = arith.mulf %36, %37 : vector<16x1x8xf32>
    %cst_22 = arith.constant 2.000000e+00 : f32
    %39 = vector.broadcast %cst_22 : f32 to vector<16x1x8xf32>
    %40 = arith.subf %39, %38 : vector<16x1x8xf32>
    %41 = arith.mulf %37, %40 : vector<16x1x8xf32>
    %42 = vector.broadcast %41 : vector<16x1x8xf32> to vector<16x16x8xf32>
    %43 = arith.mulf %34, %42 : vector<16x16x8xf32>
    %44 = vector.shape_cast %43 : vector<16x16x8xf32> to vector<256x8xf32>
    %c0_23 = arith.constant 0 : index
    %c0_24 = arith.constant 0 : index
    %45 = vector.load %arg10[%c0_23, %c0_24] : memref<8x32xf32, #tpu.memory_space<vmem>>, vector<8x32xf32>
    %cst_25 = arith.constant dense<0.000000e+00> : vector<256x32xf32>
    %46 = tpu.matmul %44, %45, %cst_25 {dimension_numbers = #tpu.dot_dimension_numbers<[1], [0], [0], [1], [0, 0, 1, 1], [], []>} : vector<256x8xf32>, vector<8x32xf32>, vector<256x32xf32> -> vector<256x32xf32>
    %47 = arith.mulf %46, %13 : vector<256x32xf32>
    %48 = vector.shape_cast %47 : vector<256x32xf32> to vector<16x16x32xf32>
    %cst_26 = arith.constant dense<0.000000e+00> : vector<16x32xf32>
    %49 = vector.multi_reduction <add>, %48, %cst_26 [1] : vector<16x16x32xf32> to vector<16x32xf32>
    %c0_27 = arith.constant 0 : index
    %c0_28 = arith.constant 0 : index
    %50 = vector.load %arg7[%c0_27, %c0_28] : memref<32x32xf32, #tpu.memory_space<vmem>>, vector<32x32xf32>
    %cst_29 = arith.constant dense<0.000000e+00> : vector<16x32xf32>
    %51 = tpu.matmul %49, %50, %cst_29 {dimension_numbers = #tpu.dot_dimension_numbers<[1], [0], [0], [1], [0, 0, 1, 1], [], []>} : vector<16x32xf32>, vector<32x32xf32>, vector<16x32xf32> -> vector<16x32xf32>
    %c1 = arith.constant 1 : index
    %c0_30 = arith.constant 0 : index
    %52 = vector.load %arg8[%c1, %c0_30] : memref<4x32xf32, #tpu.memory_space<vmem>>, vector<1x32xf32>
    %53 = vector.broadcast %52 : vector<1x32xf32> to vector<16x32xf32>
    %54 = arith.addf %51, %53 : vector<16x32xf32>
    %55 = arith.addf %54, %14 : vector<16x32xf32>
    %cst_31 = arith.constant dense<0.000000e+00> : vector<16xf32>
    %56 = vector.multi_reduction <add>, %55, %cst_31 [1] : vector<16x32xf32> to vector<16xf32>
    %57 = vector.shape_cast %56 : vector<16xf32> to vector<16x1xf32>
    %cst_32 = arith.constant 3.200000e+01 : f32
    %58 = vector.broadcast %cst_32 : f32 to vector<16x1xf32>
    %59 = arith.divf %57, %58 : vector<16x1xf32>
    %60 = vector.broadcast %59 : vector<16x1xf32> to vector<16x32xf32>
    %61 = arith.subf %55, %60 : vector<16x32xf32>
    %62 = arith.mulf %61, %61 : vector<16x32xf32>
    %cst_33 = arith.constant dense<0.000000e+00> : vector<16xf32>
    %63 = vector.multi_reduction <add>, %62, %cst_33 [1] : vector<16x32xf32> to vector<16xf32>
    %64 = vector.shape_cast %63 : vector<16xf32> to vector<16x1xf32>
    %cst_34 = arith.constant 3.200000e+01 : f32
    %65 = vector.broadcast %cst_34 : f32 to vector<16x1xf32>
    %66 = arith.divf %64, %65 : vector<16x1xf32>
    %cst_35 = arith.constant 9.99999974E-6 : f32
    %67 = vector.broadcast %cst_35 : f32 to vector<16x1xf32>
    %68 = arith.addf %66, %67 : vector<16x1xf32>
    %69 = math.rsqrt %68 : vector<16x1xf32>
    %70 = vector.broadcast %69 : vector<16x1xf32> to vector<16x32xf32>
    %71 = arith.mulf %61, %70 : vector<16x32xf32>
    %c2 = arith.constant 2 : index
    %c0_36 = arith.constant 0 : index
    %72 = vector.load %arg8[%c2, %c0_36] : memref<4x32xf32, #tpu.memory_space<vmem>>, vector<1x32xf32>
    %73 = vector.broadcast %72 : vector<1x32xf32> to vector<16x32xf32>
    %74 = arith.mulf %71, %73 : vector<16x32xf32>
    %c3 = arith.constant 3 : index
    %c0_37 = arith.constant 0 : index
    %75 = vector.load %arg8[%c3, %c0_37] : memref<4x32xf32, #tpu.memory_space<vmem>>, vector<1x32xf32>
    %76 = vector.broadcast %75 : vector<1x32xf32> to vector<16x32xf32>
    %77 = arith.addf %74, %76 : vector<16x32xf32>
    %c0_38 = arith.constant 0 : index
    %c0_39 = arith.constant 0 : index
    %78 = vector.load %arg11[%c0_38, %c0_39] : memref<16x32xf32, #tpu.memory_space<vmem>>, vector<16x32xf32>
    tpu.vector_store %arg11[%c0_38, %c0_39], %77 {strides = array<i32>} : memref<16x32xf32, #tpu.memory_space<vmem>>, vector<16x32xf32>,
    return
  }
  func.func @transform_0(%arg0: i32) -> (i32, i32, i32) {
    %c0_i32 = arith.constant 0 : i32
    %c0_i32_0 = arith.constant 0 : i32
    %c0_i32_1 = arith.constant 0 : i32
    return %arg0, %c0_i32, %c0_i32_0 : i32, i32, i32
  }
  func.func @transform_1(%arg0: i32) -> (i32, i32, i32) {
    %c0_i32 = arith.constant 0 : i32
    %c0_i32_0 = arith.constant 0 : i32
    %c0_i32_1 = arith.constant 0 : i32
    return %arg0, %c0_i32, %c0_i32_0 : i32, i32, i32
  }
  func.func @transform_2(%arg0: i32) -> (i32, i32) {
    %c0_i32 = arith.constant 0 : i32
    %c0_i32_0 = arith.constant 0 : i32
    %c0_i32_1 = arith.constant 0 : i32
    return %c0_i32, %c0_i32_0 : i32, i32
  }
  func.func @transform_3(%arg0: i32) -> (i32, i32) {
    %c0_i32 = arith.constant 0 : i32
    %c0_i32_0 = arith.constant 0 : i32
    %c0_i32_1 = arith.constant 0 : i32
    return %c0_i32, %c0_i32_0 : i32, i32
  }
  func.func @transform_4(%arg0: i32) -> (i32, i32) {
    %c0_i32 = arith.constant 0 : i32
    %c0_i32_0 = arith.constant 0 : i32
    %c0_i32_1 = arith.constant 0 : i32
    return %c0_i32, %c0_i32_0 : i32, i32
  }
  func.func @transform_5(%arg0: i32) -> (i32, i32) {
    %c0_i32 = arith.constant 0 : i32
    %c0_i32_0 = arith.constant 0 : i32
    %c0_i32_1 = arith.constant 0 : i32
    return %c0_i32, %c0_i32_0 : i32, i32
  }
  func.func @transform_6(%arg0: i32) -> (i32, i32) {
    %c0_i32 = arith.constant 0 : i32
    %c0_i32_0 = arith.constant 0 : i32
    %c0_i32_1 = arith.constant 0 : i32
    return %c0_i32, %c0_i32_0 : i32, i32
  }
  func.func @transform_7(%arg0: i32) -> (i32, i32) {
    %c0_i32 = arith.constant 0 : i32
    %c0_i32_0 = arith.constant 0 : i32
    %c0_i32_1 = arith.constant 0 : i32
    return %c0_i32, %c0_i32_0 : i32, i32
  }
  func.func @transform_8(%arg0: i32) -> (i32, i32) {
    %c0_i32 = arith.constant 0 : i32
    %c0_i32_0 = arith.constant 0 : i32
    %c0_i32_1 = arith.constant 0 : i32
    return %c0_i32, %c0_i32_0 : i32, i32
  }
  func.func @transform_9(%arg0: i32) -> (i32, i32) {
    %c0_i32 = arith.constant 0 : i32
    %c0_i32_0 = arith.constant 0 : i32
    %c0_i32_1 = arith.constant 0 : i32
    return %c0_i32, %c0_i32_0 : i32, i32
  }
  func.func @transform_10(%arg0: i32) -> (i32, i32) {
    %c0_i32 = arith.constant 0 : i32
    %c0_i32_0 = arith.constant 0 : i32
    return %arg0, %c0_i32 : i32, i32
  }
}

</mosaic_0001>

<bundles_post_ra>
// kernel: tpu_custom_call.1
= control target key start
LH: loop header
LB: loop body
LE: loop exit
PB: predicated region body
PF: predicated region fallthrough
CT: control target
= control target key end

     0   :  { %15 = vsyncpa [#allocation3], 0  ;;  %s4736_s0 = inlined_call_operand.vmem [shape: f32[16,16,32], index: 0, kind: input, shape index: {}]   ;;  %s4737_s1 = inlined_call_operand.vmem [shape: f32[16,16,1], index: 1, kind: input, shape index: {}]   ;;  %s4738_s2 = inlined_call_operand.hbm [shape: f32[16,32], index: 2, kind: input, shape index: {}]   ;;  %s4739_s3 = inlined_call_operand.vmem [shape: f32[32,32], index: 3, kind: input, shape index: {}]   ;;  %s4740_s4 = inlined_call_operand.hbm [shape: f32[32,64], index: 4, kind: input, shape index: {}]   ;;  %s4741_s5 = inlined_call_operand.vmem [shape: f32[1,64], index: 5, kind: input, shape index: {}]   ;;  %s4742_s6 = inlined_call_operand.vmem [shape: f32[32,32], index: 6, kind: input, shape index: {}]   ;;  %s4743_s7 = inlined_call_operand.hbm [shape: f32[4,32], index: 7, kind: input, shape index: {}]   ;;  %s4744_s8 = inlined_call_operand.vmem [shape: f32[32,8], index: 8, kind: input, shape index: {}]   ;;  %s4745_s9 = inlined_call_operand.hbm [shape: f32[8,32], index: 9, kind: input, shape index: {}]   ;;  %s4746_s10 = inlined_call_operand.hbm [shape: f32[16,32], index: 10, kind: output, shape index: {}]  }
   0x1   :  { %16 = vsyncpa [#allocation6], 0 }
   0x2   :  { %17 = vsyncpa [#allocation9], 0 }
   0x3   :  { %18 = vsyncpa [#allocation4], 0  ;;  %s3441_s13 = smov [#allocation5]   ;;  %s3442_s15 = smov [#allocation2]  }
   0x4   :  { %s42_s14 = sshll.u32 %s3441_s13, 4  ;;  %s28_s16 = sshll.u32 %s3442_s15, 4  ;;  %s43_s14 = int_to_ptr.vmem [resolvable:$true] %s42_s14  ;;  %s29_s16 = int_to_ptr.vmem [resolvable:$true] %s28_s16 }
   0x5   :  { %s3341_s17 = scalar_lea.vmem %s43_s14, 512  ;;  %p3346_p1 = scmp.lt.s32.totalorder %s43_s14, %s43_s14 }
   0x6   :  { %p3342_p0 = scmp.ne.s32.totalorder %s43_s14, %s3341_s17  ;;  %p3347_p2 = scmp.lt.s32.totalorder %s3341_s17, %s3341_s17 }
   0x8   :  { %p3348_p3 = por %p3347_p2, %p3346_p1 }
   0xa   :  { %p3349_p4 = pnand %p3348_p3, %p3342_p0 }
   0xc   :  { %3352 = shalt.err (!%p3349_p4)
}
   0xd   :  { %s3443_s18 = smov 128   ;;  %s3444_s19 = smov 8  }
   0xe   :  { %48 = dma.hbm_to_vmem [thread:$0]  %s4740_s4, 512, %s43_s14, [#allocation6], %s3443_s18, %s3443_s18, %s3444_s19  }
   0xf   :  { %s3361_s22 = scalar_lea.vmem %s29_s16, 256  ;;  %p3366_p6 = scmp.lt.s32.totalorder %s29_s16, %s29_s16 }
  0x10   :  { %p3362_p5 = scmp.ne.s32.totalorder %s29_s16, %s3361_s22  ;;  %p3367_p7 = scmp.lt.s32.totalorder %s3361_s22, %s3361_s22 }
  0x12   :  { %p3368_p8 = por %p3367_p7, %p3366_p6 }
  0x14   :  { %p3369_p9 = pnand %p3368_p8, %p3362_p5 }
  0x16   :  { %3372 = shalt.err (!%p3369_p9)
}
  0x17   :  { %34 = dma.hbm_to_vmem [thread:$0]  %s4738_s2, 256, %s29_s16, [#allocation3], %s3443_s18, %s3443_s18, %s3444_s19  }
  0x18   :  { %s3445_s25 = smov [#allocation7]   ;;  %s3446_s27 = smov [#allocation8]  }
  0x19   :  { %s59_s26 = sshll.u32 %s3445_s25, 4  ;;  %s71_s28 = sshll.u32 %s3446_s27, 4  ;;  %s60_s26 = int_to_ptr.vmem [resolvable:$true] %s59_s26  ;;  %s72_s28 = int_to_ptr.vmem [resolvable:$true] %s71_s28 }
  0x1a   :  { %s3381_s4 = scalar_lea.vmem %s60_s26, 64  ;;  %p3386_p11 = scmp.lt.s32.totalorder %s60_s26, %s60_s26 }
  0x1b   :  { %p3382_p10 = scmp.ne.s32.totalorder %s60_s26, %s3381_s4  ;;  %p3387_p12 = scmp.lt.s32.totalorder %s3381_s4, %s3381_s4 }
  0x1d   :  { %p3388_p13 = por %p3387_p12, %p3386_p11 }
  0x1f   :  { %p3389_p0 = pnand %p3388_p13, %p3382_p10 }
  0x21   :  { %3392 = shalt.err (!%p3389_p0)
}
  0x22   :  { %62 = dma.hbm_to_vmem [thread:$0]  %s4743_s7, 64, %s60_s26, [#allocation6]  }
  0x23   :  { %s3401_s11 = scalar_lea.vmem %s72_s28, 128  ;;  %p3406_p2 = scmp.lt.s32.totalorder %s72_s28, %s72_s28 }
  0x24   :  { %p3402_p1 = scmp.ne.s32.totalorder %s72_s28, %s3401_s11  ;;  %p3407_p3 = scmp.lt.s32.totalorder %s3401_s11, %s3401_s11 }
  0x26   :  { %p3408_p4 = por %p3407_p3, %p3406_p2 }
  0x28   :  { %p3409_p5 = pnand %p3408_p4, %p3402_p1 }
  0x2a   :  { %3412 = shalt.err (!%p3409_p5)
}
  0x2b   :  { %74 = dma.hbm_to_vmem [thread:$0]  %s4745_s9, 128, %s72_s28, [#allocation9]  }
  0x2c   :  { %3433 = dma.done.wait [#allocation3], 256  }
  0x2d   :  { %3434 = vsyncadd [#allocation3], 4294967040 }
  0x2e   :  { %3435 = dma.done.wait [#allocation6], 576  }
  0x2f   :  { %3436 = vsyncadd [#allocation6], 4294966720 }
  0x30   :  { %3437 = dma.done.wait [#allocation9], 128  }
  0x31   :  { %3438 = vsyncadd [#allocation9], 4294967168  ;;  %v3447_v0 = vmov 0   ;;  %v122_v1 = vld [vmem:[#allocation5 + $0x18] sm:$0xff]  ;;  %v121_v2 = vld [vmem:[#allocation5 + $0x10] sm:$0xff]  ;;  %vm130_vm0 = vcmask 261120  }
  0x32   :  { %3232 = vset.pattern.permute.xlu1 %v3447_v0  ;;  %3231 = vset.pattern.permute.xlu0 %v3447_v0  ;;  %v120_v3 = vld [vmem:[#allocation5 + $0x8] sm:$0xff]  ;;  %v87_v4 = vld [vmem:[%s4736_s0] sm:$0xff]  ;;  %v3530_v5 = vld [vmem:[%s4736_s0 + $0x8] sm:$0xff]  ;;  %vm655_vm1 = vcmask 1041409   ;;  %vm657_vm2 = vcmask 1042434   ;;  %vm659_vm3 = vcmask 1043459  }
  0x33   :  { %3029 = vmatprep.subr.mxu0 %v122_v1  ;;  %3213 = vmatprep.subr.mxu1 %v122_v1  ;;  %v486_v6 = vsel %vm130_vm0, %v87_v4, -inf  ;;  %v487_v7 = vsel %vm130_vm0, %v3530_v5, -inf  ;;  %v3538_v8 = vld [vmem:[%s4736_s0 + $0x80] sm:$0xff]  ;;  %v3543_v9 = vld [vmem:[%s4736_s0 + $0x88] sm:$0xff]  ;;  %v3548_v10 = vld [vmem:[%s4736_s0 + $0x90] sm:$0xff]  ;;  %vm661_vm4 = vcmask 1044484  }
  0x34   :  { %3030 = vmatpush3.msra.mxu0 %v122_v1  ;;  %3217 = vmatpush3.msra.mxu1 %v122_v1  ;;  %v488_v11 = vmax.f32 %v486_v6, %v487_v7  ;;  %v3553_v12 = vld [vmem:[%s4736_s0 + $0x98] sm:$0xff]  ;;  %v107_v13 = vld [vmem:[%s4736_s0 + $0xa0] sm:$0xff]  ;;  %v108_v14 = vld [vmem:[%s4736_s0 + $0xa8] sm:$0xff]  ;;  %v558_v15 = vsel %vm130_vm0, %v3538_v8, -inf  ;;  %v559_v16 = vsel %vm130_vm0, %v3543_v9, -inf  ;;  %v567_v17 = vsel %vm130_vm0, %v3548_v10, -inf }
  0x35   :  { %3031 = vmatprep.subr.mxu0 %v121_v2  ;;  %3214 = vmatprep.subr.mxu1 %v121_v2  ;;  %v119_v18 = vld [vmem:[#allocation5] sm:$0xff]  ;;  %v560_v19 = vmax.f32 %v558_v15, %v559_v16  ;;  %v568_v20 = vsel %vm130_vm0, %v3553_v12, -inf  ;;  %v576_v21 = vsel %vm130_vm0, %v107_v13, -inf  ;;  %v577_v22 = vsel %vm130_vm0, %v108_v14, -inf  ;;  %v90_v29 = vld [vmem:[%s4736_s0 + $0x18] sm:$0xff]  ;;  %v91_v35 = vld [vmem:[%s4736_s0 + $0x20] sm:$0xff] }
  0x36   :  { %3032 = vmatpush3.msra.mxu0 %v121_v2  ;;  %3218 = vmatpush3.msra.mxu1 %v121_v2  ;;  %v89_v23 = vld [vmem:[%s4736_s0 + $0x10] sm:$0xff]  ;;  %v489_v25 = vrot.slane %v488_v11, 4  ;;  %v569_v26 = vmax.f32 %v567_v17, %v568_v20  ;;  %v578_v27 = vmax.f32 %v576_v21, %v577_v22  ;;  %v110_v30 = vld [vmem:[%s4736_s0 + $0xb8] sm:$0xff]  ;;  %v496_v33 = vsel %vm130_vm0, %v90_v29, -inf  ;;  %v111_v36 = vld [vmem:[%s4736_s0 + $0xc0] sm:$0xff]  ;;  %s3448_s17 = smov 96  }
  0x37   :  { %v109_v24 = vld [vmem:[%s4736_s0 + $0xb0] sm:$0xff]  ;;  %3033 = vmatprep.subr.mxu0 %v120_v3  ;;  %3215 = vmatprep.subr.mxu1 %v120_v3  ;;  %v495_v28 = vsel %vm130_vm0, %v89_v23, -inf  ;;  %v561_v31 = vrot.slane %v560_v19, 4  ;;  %v586_v34 = vsel %vm130_vm0, %v110_v30, -inf  ;;  %v3596_v41 = vld [vmem:[%s4736_s0 + $0x28] sm:$0xff]  ;;  %v633_v44 = vld [vmem:[%s4739_s3 + $0x18] sm:$0xff] }
  0x38   :  { %3034 = vmatpush3.msra.mxu0 %v120_v3  ;;  %3219 = vmatpush3.msra.mxu1 %v120_v3  ;;  %v585_v32 = vsel %vm130_vm0, %v109_v24, -inf  ;;  %v490_v37 = vmax.f32 %v488_v11, %v489_v25  ;;  %v570_v38 = vrot.slane %v569_v26, 4  ;;  %v579_v39 = vrot.slane %v578_v27, 4  ;;  %v3601_v42 = vld [vmem:[%s4736_s0 + $0xc8] sm:$0xff]  ;;  %v632_v54 = vld [vmem:[%s4739_s3 + $0x10] sm:$0xff]  ;;  %v1292_v16 = vld [vmem:[%s4737_s1] sm:$0xff] }
  0x39   :  { %3035 = vmatprep.subr.mxu0 %v119_v18  ;;  %3216 = vmatprep.subr.mxu1 %v119_v18  ;;  %v497_v40 = vmax.f32 %v495_v28, %v496_v33  ;;  %v562_v43 = vmax.f32 %v560_v19, %v561_v31  ;;  %v587_v45 = vmax.f32 %v585_v32, %v586_v34  ;;  %v504_v46 = vsel %vm130_vm0, %v91_v35, -inf  ;;  %v93_v57 = vld [vmem:[%s4736_s0 + $0x30] sm:$0xff]  ;;  %v94_v21 = vld [vmem:[%s4736_s0 + $0x38] sm:$0xff] }
  0x3a   :  { %3036 = vmatpush3.msra.mxu0 %v119_v18  ;;  %3220 = vmatpush3.msra.mxu1 %v119_v18  ;;  %v594_v47 = vsel %vm130_vm0, %v111_v36, -inf  ;;  %v491_v48 = vrot.slane %v490_v37, 2  ;;  %v571_v49 = vmax.f32 %v569_v26, %v570_v38  ;;  %v580_v50 = vmax.f32 %v578_v27, %v579_v39  ;;  %v1294_v15 = vld [vmem:[%s4737_s1 + $0x10] sm:$0xff]  ;;  %v114_v26 = vld [vmem:[%s4736_s0 + $0xd8] sm:$0xff]  ;;  %v1293_v38 = vld [vmem:[%s4737_s1 + $0x8] sm:$0xff] }
  0x3b   :  { %3037 = vmatprep.mubr.msk.f32.mxu0 %vm130_vm0, %v87_v4  ;;  %3067 = vmatprep.mubr.msk.f32.mxu1 %vm130_vm0, %v107_v13  ;;  %v498_v51 = vrot.slane %v497_v40, 4  ;;  %v563_v52 = vrot.slane %v562_v43, 2  ;;  %v588_v53 = vrot.slane %v587_v45, 4  ;;  %v505_v55 = vsel %vm130_vm0, %v3596_v41, -inf  ;;  %v1295_v31 = vld [vmem:[%s4737_s1 + $0x18] sm:$0xff] }
  0x3c   :  { %3038 = vmatmul.mubr.msk.f32.vlgmr.msra.gmra.mxu0 %vm130_vm0, %v3530_v5  ;;  %3068 = vmatmul.mubr.msk.f32.vlgmr.msra.gmra.mxu1 %vm130_vm0, %v108_v14  ;;  %v595_v56 = vsel %vm130_vm0, %v3601_v42, -inf  ;;  %v3623_v58 = vmax.f32 %v490_v37, %v491_v48  ;;  %v572_v59 = vrot.slane %v571_v49, 2  ;;  %v581_v60 = vrot.slane %v580_v50, 2  ;;  %v113_v5 = vld [vmem:[%s4736_s0 + $0xd0] sm:$0xff]  ;;  %v631_v14 = vld [vmem:[%s4739_s3 + $0x8] sm:$0xff]  ;;  %v630_v37 = vld [vmem:[%s4739_s3] sm:$0xff] }
  0x3d   :  { %3085 = vmatprep.subr.mxu1 %v633_v44  ;;  %3040 = vmatprep.mubr.msk.f32.mxu0 %vm130_vm0, %v89_v23  ;;  %v499_v61 = vmax.f32 %v497_v40, %v498_v51  ;;  %v564_v62 = vmax.f32 %v562_v43, %v563_v52  ;;  %v589_v63 = vmax.f32 %v587_v45, %v588_v53  ;;  %v513_v4 = vsel %vm130_vm0, %v93_v57, -inf  ;;  %v1297_v52 = vld [vmem:[%s4737_s1 + $0x28] sm:$0xff] }
  0x3e   :  { %3086 = vmatpush3.msra.mxu1 %v633_v44  ;;  %3070 = vmatprep.mubr.msk.f32.mxu1 %vm130_vm0, %v109_v24  ;;  %v506_v0 = vmax.f32 %v504_v46, %v505_v55  ;;  %v573_v1 = vmax.f32 %v571_v49, %v572_v59  ;;  %v582_v2 = vmax.f32 %v580_v50, %v581_v60  ;;  %v493_v17 = vrot.slane %v3623_v58, 1  ;;  %v96_v46 = vld [vmem:[%s4736_s0 + $0x48] sm:$0xff]  ;;  %v1296_v59 = vld [vmem:[%s4737_s1 + $0x20] sm:$0xff] }
  0x3f   :  { %v500_v3 = vrot.slane %v499_v61, 2  ;;  %3087 = vmatprep.subr.mxu1 %v632_v54  ;;  %v565_v6 = vrot.slane %v564_v62, 1  ;;  %v590_v7 = vrot.slane %v589_v63, 2  ;;  %v596_v13 = vmax.f32 %v594_v47, %v595_v56  ;;  %1336 = vperm.xlu1 %3232, %v1294_v15   ;;  %v116_v47 = vld [vmem:[%s4736_s0 + $0xe8] sm:$0xff] }
  0x40   :  { %3041 = vmatmul.mubr.msk.f32.gmra.mxu0 %vm130_vm0, %v90_v29  ;;  %3071 = vmatmul.mubr.msk.f32.gmra.mxu1 %vm130_vm0, %v110_v30  ;;  %v507_v11 = vrot.slane %v506_v0, 4  ;;  %v574_v18 = vrot.slane %v573_v1, 1  ;;  %v583_v19 = vrot.slane %v582_v2, 1  ;;  %v603_v30 = vsel %vm130_vm0, %v113_v5, -inf }
  0x41   :  { %v501_v20 = vmax.f32 %v499_v61, %v500_v3  ;;  %3043 = vmatprep.mubr.msk.f32.mxu0 %vm130_vm0, %v91_v35  ;;  %3073 = vmatprep.mubr.msk.f32.mxu1 %vm130_vm0, %v111_v36  ;;  %v566_v22 = vmax.f32 %v564_v62, %v565_v6  ;;  %v591_v23 = vmax.f32 %v589_v63, %v590_v7  ;;  %v597_v25 = vrot.slane %v596_v13, 4  ;;  %v95_v36 = vld [vmem:[%s4736_s0 + $0x40] sm:$0xff] }
  0x42   :  { %3088 = vmatpush3.msra.mxu1 %v632_v54  ;;  %v508_v24 = vmax.f32 %v506_v0, %v507_v11  ;;  %v575_v27 = vmax.f32 %v573_v1, %v574_v18  ;;  %v584_v28 = vmax.f32 %v582_v2, %v583_v19  ;;  %1326 = vperm.xlu0 %3231, %v1292_v16   ;;  %v514_v35 = vsel %vm130_vm0, %v94_v21, -inf  ;;  %v98_v0 = vld [vmem:[%s4736_s0 + $0x58] sm:$0xff]  ;;  %v100_v19 = vld [vmem:[%s4736_s0 + $0x68] sm:$0xff] }
  0x43   :  { %v502_v29 = vrot.slane %v501_v20, 1  ;;  %3089 = vmatprep.subr.mxu1 %v631_v14  ;;  %v592_v32 = vrot.slane %v591_v23, 1  ;;  %v598_v34 = vmax.f32 %v596_v13, %v597_v25  ;;  %v515_v40 = vmax.f32 %v513_v4, %v514_v35  ;;  %1341 = vperm.xlu1 %3232, %v1295_v31   ;;  %v118_v4 = vld [vmem:[%s4736_s0 + $0xf8] sm:$0xff]  ;;  %v99_v13 = vld [vmem:[%s4736_s0 + $0x60] sm:$0xff] }
  0x44   :  { %3044 = vmatmul.mubr.msk.f32.gmra.mxu0 %vm130_vm0, %v3596_v41  ;;  %v509_v33 = vrot.slane %v508_v24, 2  ;;  %3074 = vmatmul.mubr.msk.f32.gmra.mxu1 %vm130_vm0, %v3601_v42  ;;  %v669_v39 = vsel %vm655_vm1, %v575_v27, %v566_v22  ;;  %v604_v41 = vsel %vm130_vm0, %v114_v26, -inf  ;;  %v115_v42 = vld [vmem:[%s4736_s0 + $0xe0] sm:$0xff]  ;;  %v3677_v43 = vmax.f32 %v3623_v58, %v493_v17  ;;  %v117_v58 = vld [vmem:[%s4736_s0 + $0xf0] sm:$0xff] }
  0x45   :  { %3046 = vmatprep.mubr.msk.f32.mxu0 %vm130_vm0, %v93_v57  ;;  %3076 = vmatprep.mubr.msk.f32.mxu1 %vm130_vm0, %v113_v5  ;;  %v599_v45 = vrot.slane %v598_v34, 2  ;;  %v3685_v48 = vmax.f32 %v501_v20, %v502_v29  ;;  %v516_v49 = vrot.slane %v515_v40, 4  ;;  %v605_v50 = vmax.f32 %v603_v30, %v604_v41  ;;  %v97_v57 = vld [vmem:[%s4736_s0 + $0x50] sm:$0xff] }
  0x46   :  { %v510_v44 = vmax.f32 %v508_v24, %v509_v33  ;;  %3090 = vmatpush3.msra.mxu1 %v631_v14  ;;  %v522_v51 = vsel %vm130_vm0, %v95_v36, -inf  ;;  %1331 = vperm.xlu0 %3231, %v1293_v38   ;;  %v3692_v53 = vsel %vm657_vm2, %v584_v28, %v669_v39  ;;  %v3694_v54 = vmax.f32 %v591_v23, %v592_v32  ;;  %v1299_v14 = vld [vmem:[%s4737_s1 + $0x38] sm:$0xff]  ;;  %v1298_v20 = vld [vmem:[%s4737_s1 + $0x30] sm:$0xff] }
  0x47   :  { %3091 = vmatprep.subr.mxu1 %v630_v37  ;;  %v612_v56 = vsel %vm130_vm0, %v115_v42, -inf  ;;  %v517_v60 = vmax.f32 %v515_v40, %v516_v49  ;;  %v606_v61 = vrot.slane %v605_v50, 4  ;;  %v523_v62 = vsel %vm130_vm0, %v96_v46, -inf  ;;  %1351 = vperm.xlu1 %3232, %v1297_v52   ;;  %v101_v33 = vld [vmem:[%s4736_s0 + $0x70] sm:$0xff]  ;;  %v102_v39 = vld [vmem:[%s4736_s0 + $0x78] sm:$0xff]  ;;  %v1300_v40 = vld [vmem:[%s4737_s1 + $0x40] sm:$0xff] }
  0x48   :  { %v511_v55 = vrot.slane %v510_v44, 1  ;;  %3047 = vmatmul.mubr.msk.f32.gmra.mxu0 %vm130_vm0, %v94_v21  ;;  %3077 = vmatmul.mubr.msk.f32.gmra.mxu1 %vm130_vm0, %v114_v26  ;;  %v613_v63 = vsel %vm130_vm0, %v116_v47, -inf  ;;  %v3715_v1 = vmax.f32 %v598_v34, %v599_v45  ;;  %v524_v2 = vmax.f32 %v522_v51, %v523_v62  ;;  %v1301_v34 = vld [vmem:[%s4737_s1 + $0x48] sm:$0xff] }
  0x49   :  { %3049 = vmatprep.mubr.msk.f32.mxu0 %vm130_vm0, %v95_v36  ;;  %3079 = vmatprep.mubr.msk.f32.mxu1 %vm130_vm0, %v115_v42  ;;  %v614_v3 = vmax.f32 %v612_v56, %v613_v63  ;;  %v518_v5 = vrot.slane %v517_v60, 2  ;;  %v607_v6 = vmax.f32 %v605_v50, %v606_v61  ;;  %v531_v7 = vsel %vm130_vm0, %v97_v57, -inf }
  0x4a   :  { %3092 = vmatpush3.msra.mxu1 %v630_v37  ;;  %v621_v11 = vsel %vm130_vm0, %v117_v58, -inf  ;;  %1346 = vperm.xlu0 %3231, %v1296_v59   ;;  %v512_v15 = vmax.f32 %v510_v44, %v511_v55  ;;  %v525_v16 = vrot.slane %v524_v2, 4  ;;  %v532_v18 = vsel %vm130_vm0, %v98_v0, -inf }
  0x4b   :  { %v615_v17 = vrot.slane %v614_v3, 4  ;;  %v519_v21 = vmax.f32 %v517_v60, %v518_v5  ;;  %v608_v22 = vrot.slane %v607_v6, 2  ;;  %v533_v23 = vmax.f32 %v531_v7, %v532_v18  ;;  %1361 = vperm.xlu1 %3232, %v1299_v14   ;;  %v1302_v60 = vld [vmem:[%s4737_s1 + $0x50] sm:$0xff] }
  0x4c   :  { %3050 = vmatmul.mubr.msk.f32.gmra.mxu0 %vm130_vm0, %v96_v46  ;;  %3080 = vmatmul.mubr.msk.f32.gmra.mxu1 %vm130_vm0, %v116_v47  ;;  %v622_v24 = vsel %vm130_vm0, %v118_v4, -inf  ;;  %v526_v25 = vmax.f32 %v524_v2, %v525_v16  ;;  %v540_v28 = vsel %vm130_vm0, %v99_v13, -inf  ;;  %v541_v32 = vsel %vm130_vm0, %v100_v19, -inf }
  0x4d   :  { %3052 = vmatprep.mubr.msk.f32.mxu0 %vm130_vm0, %v97_v57  ;;  %3082 = vmatprep.mubr.msk.f32.mxu1 %vm130_vm0, %v117_v58  ;;  %v616_v26 = vmax.f32 %v614_v3, %v615_v17  ;;  %v623_v27 = vmax.f32 %v621_v11, %v622_v24  ;;  %v520_v29 = vrot.slane %v519_v21, 1  ;;  %v609_v30 = vmax.f32 %v607_v6, %v608_v22  ;;  %v1307_v22 = vld [vmem:[%s4737_s1 + $0x78] sm:$0xff] }
  0x4e   :  { %v534_v31 = vrot.slane %v533_v23, 4  ;;  %1356 = vperm.xlu0 %3231, %v1298_v20   ;;  %v527_v35 = vrot.slane %v526_v25, 2  ;;  %v542_v38 = vmax.f32 %v540_v28, %v541_v32  ;;  %v656_v41 = vsel %vm655_vm1, %v3685_v48, %v3677_v43  ;;  %v1303_v43 = vld [vmem:[%s4737_s1 + $0x58] sm:$0xff] }
  0x4f   :  { %v617_v36 = vrot.slane %v616_v26, 2  ;;  %v624_v37 = vrot.slane %v623_v27, 4  ;;  %v601_v42 = vrot.slane %v3715_v1, 1  ;;  %v521_v44 = vmax.f32 %v519_v21, %v520_v29  ;;  %1371 = vperm.xlu1 %3232, %v1301_v34   ;;  %v1311_v34 = vld [vmem:[%s4737_s1 + $0x98] sm:$0xff] }
  0x50   :  { %3053 = vmatmul.mubr.msk.f32.gmra.mxu0 %vm130_vm0, %v98_v0  ;;  %3083 = vmatmul.mubr.msk.f32.gmra.mxu1 %vm130_vm0, %v118_v4  ;;  %v535_v45 = vmax.f32 %v533_v23, %v534_v31  ;;  %v528_v46 = vmax.f32 %v526_v25, %v527_v35  ;;  %v543_v49 = vrot.slane %v542_v38, 4  ;;  %v549_v50 = vsel %vm130_vm0, %v101_v33, -inf  ;;  %v1313_v35 = vld [vmem:[%s4737_s1 + $0xa8] sm:$0xff] }
  0x51   :  { %3055 = vmatprep.mubr.msk.f32.mxu0 %vm130_vm0, %v99_v13  ;;  %v625_v47 = vmax.f32 %v623_v27, %v624_v37  ;;  %v610_v51 = vrot.slane %v609_v30, 1  ;;  %v618_v52 = vmax.f32 %v616_v26, %v617_v36  ;;  %v550_v56 = vsel %vm130_vm0, %v102_v39, -inf  ;;  %v1312_v36 = vld [vmem:[%s4737_s1 + $0xa0] sm:$0xff]  ;;  %v1315_v37 = vld [vmem:[%s4737_s1 + $0xb8] sm:$0xff] }
  0x52   :  { %v536_v55 = vrot.slane %v535_v45, 2  ;;  %1366 = vperm.xlu0 %3231, %v1300_v40   ;;  %v529_v48 = vrot.slane %v528_v46, 1  ;;  %v544_v58 = vmax.f32 %v542_v38, %v543_v49  ;;  %v658_v59 = vsel %vm657_vm2, %v512_v15, %v656_v41  ;;  %v1314_v38 = vld [vmem:[%s4737_s1 + $0xb0] sm:$0xff]  ;;  %v1316_v40 = vld [vmem:[%s4737_s1 + $0xc0] sm:$0xff]  ;;  %v1319_v41 = vld [vmem:[%s4737_s1 + $0xd8] sm:$0xff] }
  0x53   :  { %v626_v57 = vrot.slane %v625_v47, 2  ;;  %v602_v61 = vmax.f32 %v3715_v1, %v601_v42  ;;  %v551_v63 = vmax.f32 %v549_v50, %v550_v56  ;;  %v671_v0 = vsel %vm659_vm3, %v3694_v54, %v3692_v53  ;;  %1381 = vperm.xlu1 %3232, %v1303_v43   ;;  %v1305_v1 = vld [vmem:[%s4737_s1 + $0x68] sm:$0xff]  ;;  %v1304_v53 = vld [vmem:[%s4737_s1 + $0x60] sm:$0xff]  ;;  %v1318_v42 = vld [vmem:[%s4737_s1 + $0xd0] sm:$0xff] }
  0x54   :  { %3056 = vmatmul.mubr.msk.f32.gmra.mxu0 %vm130_vm0, %v100_v19  ;;  %v537_v62 = vmax.f32 %v535_v45, %v536_v55  ;;  %v530_v2 = vmax.f32 %v528_v46, %v529_v48  ;;  %v545_v4 = vrot.slane %v544_v58, 2  ;;  %v619_v5 = vrot.slane %v618_v52, 1  ;;  %v1320_v45 = vld [vmem:[%s4737_s1 + $0xe0] sm:$0xff]  ;;  %v1323_v46 = vld [vmem:[%s4737_s1 + $0xf8] sm:$0xff]  ;;  %v969_v50 = vld [vmem:[%s4744_s8 + $0x10] sm:$0xff] }
  0x55   :  { %3058 = vmatprep.mubr.msk.f32.mxu0 %vm130_vm0, %v101_v33  ;;  %v627_v3 = vmax.f32 %v625_v47, %v626_v57  ;;  %v552_v7 = vrot.slane %v551_v63, 4  ;;  %v660_v11 = vsel %vm659_vm3, %v521_v44, %v658_v59  ;;  %v611_v13 = vmax.f32 %v609_v30, %v610_v51  ;;  %v1321_v44 = vld [vmem:[%s4737_s1 + $0xe8] sm:$0xff]  ;;  %v1322_v47 = vld [vmem:[%s4737_s1 + $0xf0] sm:$0xff]  ;;  %v970_v49 = vld [vmem:[%s4744_s8 + $0x18] sm:$0xff] }
  0x56   :  { %v538_v6 = vrot.slane %v537_v62, 1  ;;  %1376 = vperm.xlu0 %3231, %v1302_v60   ;;  %v546_v14 = vmax.f32 %v544_v58, %v545_v4  ;;  %vm663_vm5 = vcmask 1045509   ;;  %v672_v16 = vsel %vm661_vm4, %v602_v61, %v671_v0  ;;  %3096 = vmatprep.subr.mxu1 %v970_v49  ;;  %v968_v51 = vld [vmem:[%s4744_s8 + $0x8] sm:$0xff]  ;;  %v3877_v55 = vld [vmem:[%s4741_s5] ss:$0 sm:$0xff] }
  0x57   :  { %v553_v15 = vmax.f32 %v551_v63, %v552_v7  ;;  %v628_v17 = vrot.slane %v627_v3, 1  ;;  %v662_v19 = vsel %vm661_vm4, %v530_v2, %v660_v11  ;;  %1391 = vperm.xlu1 %3232, %v1305_v1   ;;  %v620_v20 = vmax.f32 %v618_v52, %v619_v5  ;;  %v967_v52 = vld [vmem:[%s4744_s8] sm:$0xff] }
  0x58   :  { %3059 = vmatmul.mubr.msk.f32.gmra.mxu0 %vm130_vm0, %v102_v39  ;;  %v539_v54 = vmax.f32 %v537_v62, %v538_v6  ;;  %v547_v18 = vrot.slane %v546_v14, 1  ;;  %vm665_vm6 = vcmask 1046534   ;;  %v673_v24 = vsel %vm663_vm5, %v611_v13, %v672_v16  ;;  %v1317_v39 = vld [vmem:[%s4737_s1 + $0xc8] sm:$0xff] }
  0x59   :  { %3061 = vmatprep.mubr.msk.f32.mxu0 %vm130_vm0, %v3538_v8  ;;  %v554_v21 = vrot.slane %v553_v15, 2  ;;  %v1306_v8 = vld [vmem:[%s4737_s1 + $0x70] sm:$0xff]  ;;  %v629_v27 = vmax.f32 %v627_v3, %v628_v17  ;;  %vm667_vm7 = vcmask 1047559   ;;  %v674_v29 = vsel %vm665_vm6, %v620_v20, %v673_v24 }
  0x5a   :  { %1386 = vperm.xlu0 %3231, %v1304_v53   ;;  %v548_v23 = vmax.f32 %v546_v14, %v547_v18  ;;  %v664_v26 = vsel %vm663_vm5, %v539_v54, %v662_v19  ;;  %vm1516_vm8 = vcmask 64512  }
  0x5b   :  { %v555_v25 = vmax.f32 %v553_v15, %v554_v21  ;;  %1401 = vperm.xlu1 %3232, %v1307_v22   ;;  %v3811_v32 = vsel %vm667_vm7, %v629_v27, %v674_v29 }
  0x5c   :  { %3062 = vmatmul.mubr.msk.f32.gmra.mxu0 %vm130_vm0, %v3543_v9  ;;  %v1309_v9 = vld [vmem:[%s4737_s1 + $0x88] sm:$0xff]  ;;  %v666_v30 = vsel %vm665_vm6, %v548_v23, %v664_v26  ;;  %4750 = vst [vmem:[#allocation15_spill] sm:$0xff] %v3811_v32 }
  0x5d   :  { %3064 = vmatprep.mubr.msk.f32.mxu0 %vm130_vm0, %v3548_v10  ;;  %v556_v28 = vrot.slane %v555_v25, 1  ;;  %v1308_v10 = vld [vmem:[%s4737_s1 + $0x80] sm:$0xff] }
  0x5e   :  { %1396 = vperm.xlu0 %3231, %v1306_v8  }
  0x5f   :  { %v557_v31 = vmax.f32 %v555_v25, %v556_v28  ;;  %1411 = vperm.xlu1 %3232, %v1309_v9  }
  0x60   :  { %3065 = vmatmul.mubr.msk.f32.gmra.mxu0 %vm130_vm0, %v3553_v12  ;;  %v1310_v12 = vld [vmem:[%s4737_s1 + $0x90] sm:$0xff] }
  0x61   :  { %v3814_v33 = vsel %vm667_vm7, %v557_v31, %v666_v30 }
  0x62   :  { %4751 = vst [vmem:[#allocation16_spill] sm:$0xff] %v3814_v33  ;;  %1406 = vperm.xlu0 %3231, %v1308_v10   ;;  %3093 = vmatprep.mubr.msk.f32.mxu1 %vm130_vm0, %v3814_v33 }
  0x63   :  { %3094 = vmatmul.mubr.msk.f32.vlgmr.msra.gmra.mxu1 %vm130_vm0, %v3811_v32  ;;  %1421 = vperm.xlu1 %3232, %v1311_v34  }
  0x64   :  { %3097 = vmatpush3.msra.mxu1 %v970_v49 }
  0x65   :  { %3098 = vmatprep.subr.mxu1 %v969_v50 }
  0x66   :  { %1416 = vperm.xlu0 %3231, %v1310_v12   ;;  %3099 = vmatpush3.msra.mxu1 %v969_v50 }
  0x67   :  { %1431 = vperm.xlu1 %3232, %v1313_v35   ;;  %3100 = vmatprep.subr.mxu1 %v968_v51 }
  0x68   :  { %3101 = vmatpush3.msra.mxu1 %v968_v51 }
  0x69   :  { %3102 = vmatprep.subr.mxu1 %v967_v52 }
  0x6a   :  { %1426 = vperm.xlu0 %3231, %v1312_v36   ;;  %3103 = vmatpush3.msra.mxu1 %v967_v52  ;;  %v3449_v36 = vmov 1966171168  }
  0x6b   :  { %1441 = vperm.xlu1 %3232, %v1315_v37   ;;  %v759_v37 = vunpack.c.l.s4 %v3449_v36 }
  0x6e   :  { %1436 = vperm.xlu0 %3231, %v1314_v38   ;;  %v761_v38 = vlaneseq }
  0x6f   :  { %1451 = vperm.xlu1 %3232, %v1317_v39  }
  0x72   :  { %1446 = vperm.xlu0 %3231, %v1316_v40  }
  0x73   :  { %1461 = vperm.xlu1 %3232, %v1319_v41  }
  0x76   :  { %1456 = vperm.xlu0 %3231, %v1318_v42  }
  0x77   :  { %1471 = vperm.xlu1 %3232, %v1321_v44   ;;  %v760_v44 = vunpack.c.0.s8 %v759_v37 }
  0x7a   :  { %1466 = vperm.xlu0 %3231, %v1320_v45   ;;  %v762_v45 = vshrl.u32 %v761_v38, 7 }
  0x7b   :  { %1481 = vperm.xlu1 %3232, %v1323_v46  }
  0x7c   :  { %v4000_v52 = vsub.s32 %v760_v44, %v762_v45 }
  0x7e   :  { %1476 = vperm.xlu0 %3231, %v1322_v47   ;;  %v3992_v47 = vld [vmem:[#allocation7] ss:$0 sm:$0xff] }
  0xfc   :  { %v3039_v56 = vpop.f32.mrf.mxu0  ;;  %v3069_v43 = vpop.f32.mrf.mxu1 }
  0xfd   :  { %v3880_v48 = vadd.f32 %v3039_v56, %v3877_v55  ;;  %v3888_v62 = vadd.f32 %v3069_v43, %v3877_v55 }
  0xfe   :  { %v293_v57 = vpop.f32.mrf.mxu0  ;;  %v393_v58 = vpop.f32.mrf.mxu1 }
  0xff   :  { %v3883_v59 = vadd.f32 %v3877_v55, %v293_v57  ;;  %2353 = vrot.lane.b32.xlu1 %v3880_v48, %s3448_s17  ;;  %v3893_v2 = vadd.f32 %v3877_v55, %v393_v58 }
 0x100   :  { %v3042_v60 = vpop.f32.mrf.mxu0  ;;  %v3072_v61 = vpop.f32.mrf.mxu1 }
 0x101   :  { %2351 = vrot.lane.b32.xlu0 %v3883_v59, %s3448_s17  ;;  %v3896_v3 = vadd.f32 %v3042_v60, %v3877_v55  ;;  %v3908_v1 = vadd.f32 %v3072_v61, %v3877_v55 }
 0x102   :  { %v303_v63 = vpop.f32.mrf.mxu0  ;;  %v403_v0 = vpop.f32.mrf.mxu1 }
 0x103   :  { %2393 = vrot.lane.b32.xlu1 %v3888_v62, %s3448_s17  ;;  %v3901_v5 = vadd.f32 %v3877_v55, %v303_v63  ;;  %v3913_v53 = vadd.f32 %v3877_v55, %v403_v0  ;;  %v4019_v0 = vld [vmem:[#allocation2] sm:$0xff] }
 0x104   :  { %v3045_v4 = vpop.f32.mrf.mxu0  ;;  %v3075_v6 = vpop.f32.mrf.mxu1 }
 0x105   :  { %2391 = vrot.lane.b32.xlu0 %v3893_v2, %s3448_s17  ;;  %v3916_v54 = vadd.f32 %v3045_v4, %v3877_v55  ;;  %v3928_v20 = vadd.f32 %v3075_v6, %v3877_v55  ;;  %v4021_v4 = vsub.s32 0, %v762_v45 }
 0x106   :  { %v313_v7 = vpop.f32.mrf.mxu0  ;;  %v413_v13 = vpop.f32.mrf.mxu1 }
 0x107   :  { %2357 = vrot.lane.b32.xlu1 %v3896_v3, %s3448_s17  ;;  %v3921_v16 = vadd.f32 %v3877_v55, %v313_v7  ;;  %v3933_v23 = vadd.f32 %v3877_v55, %v413_v13  ;;  %v4023_v7 = vld [vmem:[#allocation2 + $0x8] sm:$0xff] }
 0x108   :  { %v3048_v11 = vpop.f32.mrf.mxu0  ;;  %v3078_v17 = vpop.f32.mrf.mxu1 }
 0x109   :  { %2355 = vrot.lane.b32.xlu0 %v3901_v5, %s3448_s17  ;;  %v3936_v24 = vadd.f32 %v3048_v11, %v3877_v55  ;;  %v3950_v27 = vadd.f32 %v3078_v17, %v3877_v55  ;;  %v456_v11 = vadd.f32 %v4019_v0, %v3901_v5  ;;  %v454_v17 = vadd.f32 %v4019_v0, %v3883_v59 }
 0x10a   :  { %v323_v14 = vpop.f32.mrf.mxu0  ;;  %v423_v21 = vpop.f32.mrf.mxu1  ;;  %v458_v59 = vadd.f32 %v4019_v0, %v3921_v16 }
 0x10b   :  { %2397 = vrot.lane.b32.xlu1 %v3908_v1, %s3448_s17  ;;  %v3941_v8 = vadd.f32 %v3877_v55, %v323_v14  ;;  %v3957_v9 = vadd.f32 %v3877_v55, %v423_v21 }
 0x10c   :  { %v3051_v15 = vpop.f32.mrf.mxu0  ;;  %v3943_v25 = vpop.f32.mrf.mxu1 }
 0x10d   :  { %2395 = vrot.lane.b32.xlu0 %v3913_v53, %s3448_s17  ;;  %v3960_v30 = vadd.f32 %v3051_v15, %v3877_v55  ;;  %v455_v15 = vadd.f32 %v4023_v7, %v3880_v48  ;;  %v457_v48 = vadd.f32 %v4023_v7, %v3896_v3  ;;  %v4058_v45 = vadd.f32 %v3943_v25, %v3877_v55 }
 0x10e   :  { %v333_v18 = vpop.f32.mrf.mxu0  ;;  %v3952_v28 = vpop.f32.mrf.mxu1  ;;  %v459_v3 = vadd.f32 %v4023_v7, %v3916_v54 }
 0x10f   :  { %2361 = vrot.lane.b32.xlu1 %v3916_v54, %s3448_s17  ;;  %v3969_v34 = vadd.f32 %v3877_v55, %v333_v18 }
 0x110   :  { %v3054_v19 = vpop.f32.mrf.mxu0  ;;  %v3964_v10 = vpop.f32.mrf.mxu1 }
 0x111   :  { %2359 = vrot.lane.b32.xlu0 %v3921_v16, %s3448_s17  ;;  %v3974_v12 = vadd.f32 %v3054_v19, %v3877_v55  ;;  %v460_v16 = vadd.f32 %v4019_v0, %v3941_v8  ;;  %v4078_v54 = vadd.f32 %v3964_v10, %v3877_v55 }
 0x112   :  { %v343_v22 = vpop.f32.mrf.mxu0  ;;  %v3976_v35 = vpop.f32.mrf.mxu1 }
 0x113   :  { %2401 = vrot.lane.b32.xlu1 %v3928_v20, %s3448_s17  ;;  %v3981_v40 = vadd.f32 %v3877_v55, %v343_v22  ;;  %v4092_v10 = vadd.f32 %v3877_v55, %v3976_v35 }
 0x114   :  { %v3057_v26 = vpop.f32.mrf.mxu0 }
 0x115   :  { %2399 = vrot.lane.b32.xlu0 %v3933_v23, %s3448_s17  ;;  %v3986_v41 = vadd.f32 %v3057_v26, %v3877_v55 }
 0x116   :  { %v353_v29 = vpop.f32.mrf.mxu0 }
 0x117   :  { %2365 = vrot.lane.b32.xlu1 %v3936_v24, %s3448_s17  ;;  %v3995_v49 = vadd.f32 %v3877_v55, %v353_v29 }
 0x118   :  { %v3060_v31 = vpop.f32.mrf.mxu0 }
 0x119   :  { %2363 = vrot.lane.b32.xlu0 %v3941_v8, %s3448_s17  ;;  %v4003_v56 = vadd.f32 %v3060_v31, %v3877_v55  ;;  %v461_v8 = vadd.f32 %v4023_v7, %v3936_v24  ;;  %v463_v24 = vadd.f32 %v4023_v7, %v3960_v30 }
 0x11a   :  { %v363_v39 = vpop.f32.mrf.mxu0 }
 0x11b   :  { %2405 = vrot.lane.b32.xlu1 %v3950_v27, %s3448_s17  ;;  %v4009_v58 = vadd.f32 %v3877_v55, %v363_v39 }
 0x11c   :  { %v3063_v46 = vpop.f32.mrf.mxu0 }
 0x11d   :  { %2403 = vrot.lane.b32.xlu0 %v3957_v9, %s3448_s17  ;;  %v4015_v63 = vadd.f32 %v3063_v46, %v3877_v55  ;;  %v4070_v46 = vadd.f32 %v3877_v55, %v3952_v28  ;;  %v462_v28 = vadd.f32 %v4019_v0, %v3969_v34 }
 0x11e   :  { %v373_v43 = vpop.f32.mrf.mxu0 }
 0x11f   :  { %2369 = vrot.lane.b32.xlu1 %v3960_v30, %s3448_s17  ;;  %v4029_v14 = vadd.f32 %v3877_v55, %v373_v43  ;;  %v466_v30 = vadd.f32 %v4019_v0, %v3995_v49 }
 0x120   :  { %v3066_v6 = vpop.f32.mrf.mxu0 }
 0x121   :  { %2367 = vrot.lane.b32.xlu0 %v3969_v34, %s3448_s17  ;;  %v4040_v22 = vadd.f32 %v3066_v6, %v3877_v55 }
 0x122   :  { %v383_v29 = vpop.f32.mrf.mxu0 }
 0x123   :  { %2373 = vrot.lane.b32.xlu1 %v3974_v12, %s3448_s17  ;;  %v3988_v42 = vpop.f32.mrf.mxu1  ;;  %v4054_v44 = vadd.f32 %v3877_v55, %v383_v29  ;;  %v464_v55 = vadd.f32 %v4019_v0, %v3981_v40  ;;  %v468_v29 = vadd.f32 %v4019_v0, %v4009_v58 }
 0x125   :  { %2371 = vrot.lane.b32.xlu0 %v3981_v40, %s3448_s17  ;;  %v746_v50 = vpop.f32.mrf.mxu1 }
 0x126   :  { %v747_v51 = vadd.f32 %v3992_v47, %v746_v50 }
 0x127   :  { %2377 = vrot.lane.b32.xlu1 %v3986_v41, %s3448_s17 }
 0x128   :  { %v764_v57 = vrot.slane %v747_v51, %v4000_v52  ;;  %v757_v19 = vcombine.high %v747_v51, %v747_v51 }
 0x129   :  { %2375 = vrot.lane.b32.xlu0 %v3995_v49, %s3448_s17 }
 0x12a   :  { %v772_v60 = vcombine.high %v764_v57, %v764_v57  ;;  %v780_v61 = vrot.slane %v764_v57, %v4000_v52  ;;  %v771_v37 = vrot.slane %v757_v19, %v4000_v52 }
 0x12b   :  { %2381 = vrot.lane.b32.xlu1 %v4003_v56, %s3448_s17 }
 0x12c   :  { %v794_v13 = vrot.slane %v772_v60, %v4000_v52  ;;  %v858_v18 = vrot.slane %v780_v61, %v4021_v4  ;;  %v802_v21 = vcombine.high %v780_v61, %v780_v61  ;;  %v773_v25 = vcombine.high %v771_v37, %v771_v37 }
 0x12d   :  { %2379 = vrot.lane.b32.xlu0 %v4009_v58, %s3448_s17  ;;  %v787_v51 = vrot.slane %v771_v37, %v4000_v52 }
 0x12e   :  { %v862_v5 = vrot.slane %v794_v13, %v4021_v4  ;;  %v936_v26 = vmul.f32 %v858_v18, %v455_v15  ;;  %v935_v31 = vmul.f32 %v858_v18, %v454_v17  ;;  %v804_v38 = vcombine.high %v794_v13, %v794_v13 }
 0x12f   :  { %2385 = vrot.lane.b32.xlu1 %v4015_v63, %s3448_s17  ;;  %v866_v39 = vrot.slane %v802_v21, %v4021_v4  ;;  %v801_v61 = vrot.slane %v773_v25, %v4000_v52  ;;  %v874_v6 = vrot.slane %v787_v51, %v4021_v4  ;;  %v803_v35 = vcombine.high %v787_v51, %v787_v51 }
 0x130   :  { %v937_v36 = vmul.f32 %v862_v5, %v456_v11  ;;  %3104 = vmatprep.mubr.msk.f32.mxu1 %vm130_vm0, %v935_v31  ;;  %v938_v50 = vmul.f32 %v862_v5, %v457_v48  ;;  %v870_v57 = vrot.slane %v804_v38, %v4021_v4  ;;  %v752_v17 = vadd.f32 %v3988_v42, %v3992_v47 }
 0x131   :  { %2383 = vrot.lane.b32.xlu0 %v4029_v14, %s3448_s17  ;;  %3105 = vmatmul.mubr.msk.f32.vlgmr.msra.gmra.mxu1 %vm130_vm0, %v936_v26  ;;  %v939_v43 = vmul.f32 %v866_v39, %v458_v59  ;;  %v940_v60 = vmul.f32 %v866_v39, %v459_v3  ;;  %v943_v13 = vmul.f32 %v874_v6, %v462_v28 }
 0x132   :  { %3107 = vmatprep.mubr.msk.f32.mxu1 %vm130_vm0, %v937_v36  ;;  %v941_v11 = vmul.f32 %v870_v57, %v460_v16  ;;  %v942_v34 = vmul.f32 %v870_v57, %v461_v8  ;;  %v878_v15 = vrot.slane %v801_v61, %v4021_v4  ;;  %v465_v18 = vadd.f32 %v4023_v7, %v3974_v12 }
 0x133   :  { %2389 = vrot.lane.b32.xlu1 %v4040_v22, %s3448_s17  ;;  %v944_v19 = vmul.f32 %v874_v6, %v463_v24  ;;  %v805_v21 = vcombine.high %v801_v61, %v801_v61  ;;  %v882_v5 = vrot.slane %v803_v35, %v4021_v4  ;;  %v813_v26 = vrot.slane %v752_v17, %v4000_v52 }
 0x134   :  { %v945_v40 = vmul.f32 %v878_v15, %v464_v55  ;;  %v467_v42 = vadd.f32 %v4023_v7, %v3986_v41  ;;  %v946_v47 = vmul.f32 %v878_v15, %v465_v18  ;;  %v469_v48 = vadd.f32 %v4023_v7, %v4003_v56 }
 0x135   :  { %2387 = vrot.lane.b32.xlu0 %v4054_v44, %s3448_s17  ;;  %3108 = vmatmul.mubr.msk.f32.gmra.mxu1 %vm130_vm0, %v938_v50  ;;  %v886_v12 = vrot.slane %v805_v21, %v4021_v4  ;;  %v947_v49 = vmul.f32 %v882_v5, %v466_v30  ;;  %v821_v31 = vcombine.high %v813_v26, %v813_v26 }
 0x136   :  { %3110 = vmatprep.mubr.msk.f32.mxu1 %vm130_vm0, %v939_v43  ;;  %v829_v36 = vrot.slane %v813_v26, %v4000_v52  ;;  %v948_v59 = vmul.f32 %v882_v5, %v467_v42  ;;  %v470_v41 = vadd.f32 %v4019_v0, %v4029_v14  ;;  %v471_v3 = vadd.f32 %v4023_v7, %v4015_v63 }
 0x137   :  { %2409 = vrot.lane.b32.xlu1 %v4058_v45, %s3448_s17  ;;  %v949_v37 = vmul.f32 %v886_v12, %v468_v29  ;;  %v843_v58 = vrot.slane %v821_v31, %v4000_v52  ;;  %v950_v39 = vmul.f32 %v886_v12, %v469_v48  ;;  %v806_v16 = vcombine.high %v752_v17, %v752_v17  ;;  %v1327_v31 = vpop.permute.xlu0 %1326 }
 0x138   :  { %v890_v38 = vrot.slane %v829_v36, %v4021_v4  ;;  %v851_v50 = vcombine.high %v829_v36, %v829_v36  ;;  %v472_v25 = vadd.f32 %v4019_v0, %v4054_v44  ;;  %v473_v43 = vadd.f32 %v4023_v7, %v4040_v22 }
 0x139   :  { %2407 = vrot.lane.b32.xlu0 %v4070_v46, %s3448_s17  ;;  %3111 = vmatmul.mubr.msk.f32.gmra.mxu1 %vm130_vm0, %v940_v60  ;;  %v894_v14 = vrot.slane %v843_v58, %v4021_v4  ;;  %v820_v57 = vrot.slane %v806_v16, %v4000_v52  ;;  %v853_v8 = vcombine.high %v843_v58, %v843_v58 }
 0x13a   :  { %3113 = vmatprep.mubr.msk.f32.mxu1 %vm130_vm0, %v941_v11  ;;  %v951_v56 = vmul.f32 %v890_v38, %v470_v41  ;;  %v952_v51 = vmul.f32 %v890_v38, %v471_v3  ;;  %v898_v63 = vrot.slane %v851_v50, %v4021_v4  ;;  %v474_v44 = vadd.f32 %v4019_v0, %v3893_v2 }
 0x13b   :  { %2413 = vrot.lane.b32.xlu1 %v4078_v54, %s3448_s17  ;;  %v953_v28 = vmul.f32 %v894_v14, %v472_v25  ;;  %v954_v60 = vmul.f32 %v894_v14, %v473_v43  ;;  %v822_v61 = vcombine.high %v820_v57, %v820_v57  ;;  %v836_v6 = vrot.slane %v820_v57, %v4000_v52 }
 0x13c   :  { %v955_v11 = vmul.f32 %v898_v63, %v474_v44  ;;  %v902_v22 = vrot.slane %v853_v8, %v4021_v4  ;;  %v475_v24 = vadd.f32 %v4023_v7, %v3888_v62  ;;  %v477_v15 = vadd.f32 %v4023_v7, %v3908_v1 }
 0x13d   :  { %2411 = vrot.lane.b32.xlu0 %v4092_v10, %s3448_s17  ;;  %3114 = vmatmul.mubr.msk.f32.gmra.mxu1 %vm130_vm0, %v942_v34  ;;  %v476_v34 = vadd.f32 %v4019_v0, %v3913_v53  ;;  %v850_v55 = vrot.slane %v822_v61, %v4000_v52  ;;  %v906_v35 = vrot.slane %v836_v6, %v4021_v4 }
 0x13e   :  { %3116 = vmatprep.mubr.msk.f32.mxu1 %vm130_vm0, %v943_v13  ;;  %v956_v2 = vmul.f32 %v898_v63, %v475_v24  ;;  %v478_v62 = vadd.f32 %v4019_v0, %v3933_v23  ;;  %v958_v17 = vmul.f32 %v902_v22, %v477_v15  ;;  %v852_v53 = vcombine.high %v836_v6, %v836_v6 }
 0x13f   :  { %v957_v13 = vmul.f32 %v902_v22, %v476_v34  ;;  %v479_v52 = vadd.f32 %v4023_v7, %v3928_v20  ;;  %v480_v1 = vadd.f32 %v4019_v0, %v3957_v9  ;;  %v854_v21 = vcombine.high %v850_v55, %v850_v55 }
 0x140   :  { %v959_v18 = vmul.f32 %v906_v35, %v478_v62  ;;  %v481_v5 = vadd.f32 %v4023_v7, %v3950_v27  ;;  %v482_v20 = vadd.f32 %v4019_v0, %v4070_v46  ;;  %v484_v12 = vadd.f32 %v4019_v0, %v4092_v10  ;;  %v1332_v10 = vpop.permute.xlu0 %1331 }
 0x141   :  { %3117 = vmatmul.mubr.msk.f32.gmra.mxu1 %vm130_vm0, %v944_v19  ;;  %v910_v19 = vrot.slane %v850_v55, %v4021_v4  ;;  %v960_v30 = vmul.f32 %v906_v35, %v479_v52  ;;  %v918_v9 = vrot.slane %v854_v21, %v4021_v4  ;;  %v485_v46 = vadd.f32 %v4023_v7, %v4078_v54 }
 0x142   :  { %3119 = vmatprep.mubr.msk.f32.mxu1 %vm130_vm0, %v945_v40  ;;  %v914_v40 = vrot.slane %v852_v53, %v4021_v4 }
 0x143   :  { %v961_v23 = vmul.f32 %v910_v19, %v480_v1  ;;  %v962_v26 = vmul.f32 %v910_v19, %v481_v5  ;;  %v965_v29 = vmul.f32 %v918_v9, %v484_v12  ;;  %v966_v4 = vmul.f32 %v918_v9, %v485_v46 }
 0x144   :  { %v963_v42 = vmul.f32 %v914_v40, %v482_v20  ;;  %v1347_v48 = vpop.permute.xlu0 %1346 }
 0x145   :  { %3120 = vmatmul.mubr.msk.f32.gmra.mxu1 %vm130_vm0, %v946_v47  ;;  %v483_v47 = vadd.f32 %v4023_v7, %v4058_v45  ;;  %v1997_v45 = vld [vmem:[#allocation8] sm:$0xff] }
 0x146   :  { %3122 = vmatprep.mubr.msk.f32.mxu1 %vm130_vm0, %v947_v49  ;;  %3152 = vmatprep.subr.mxu0 %v1997_v45  ;;  %v1337_v49 = vpop.permute.xlu1 %1336 }
 0x147   :  { %v964_v27 = vmul.f32 %v914_v40, %v483_v47  ;;  %3153 = vmatpush3.msra.mxu0 %v1997_v45 }
 0x149   :  { %3123 = vmatmul.mubr.msk.f32.gmra.mxu1 %vm130_vm0, %v948_v59 }
 0x14a   :  { %3125 = vmatprep.mubr.msk.f32.mxu1 %vm130_vm0, %v949_v37  ;;  %v1342_v0 = vpop.permute.xlu1 %1341  ;;  %v1357_v37 = vpop.permute.xlu0 %1356 }
 0x14d   :  { %3126 = vmatmul.mubr.msk.f32.gmra.mxu1 %vm130_vm0, %v950_v39 }
 0x14e   :  { %3128 = vmatprep.mubr.msk.f32.mxu1 %vm130_vm0, %v951_v56  ;;  %v1352_v36 = vpop.permute.xlu1 %1351  ;;  %v1367_v39 = vpop.permute.xlu0 %1366 }
 0x151   :  { %3129 = vmatmul.mubr.msk.f32.gmra.mxu1 %vm130_vm0, %v952_v51 }
 0x152   :  { %3131 = vmatprep.mubr.msk.f32.mxu1 %vm130_vm0, %v953_v28  ;;  %v1362_v59 = vpop.permute.xlu1 %1361 }
 0x155   :  { %3132 = vmatmul.mubr.msk.f32.gmra.mxu1 %vm130_vm0, %v954_v60  ;;  %v1377_v60 = vpop.permute.xlu0 %1376 }
 0x156   :  { %3134 = vmatprep.mubr.msk.f32.mxu1 %vm130_vm0, %v955_v11  ;;  %v1372_v58 = vpop.permute.xlu1 %1371 }
 0x159   :  { %3135 = vmatmul.mubr.msk.f32.gmra.mxu1 %vm130_vm0, %v956_v2  ;;  %v1387_v52 = vpop.permute.xlu0 %1386 }
 0x15a   :  { %3137 = vmatprep.mubr.msk.f32.mxu1 %vm130_vm0, %v957_v13  ;;  %v1382_v8 = vpop.permute.xlu1 %1381 }
 0x15d   :  { %3138 = vmatmul.mubr.msk.f32.gmra.mxu1 %vm130_vm0, %v958_v17 }
 0x15e   :  { %3140 = vmatprep.mubr.msk.f32.mxu1 %vm130_vm0, %v959_v18  ;;  %v1392_v18 = vpop.permute.xlu1 %1391 }
 0x161   :  { %3141 = vmatmul.mubr.msk.f32.gmra.mxu1 %vm130_vm0, %v960_v30 }
 0x162   :  { %3143 = vmatprep.mubr.msk.f32.mxu1 %vm130_vm0, %v961_v23 }
 0x165   :  { %3144 = vmatmul.mubr.msk.f32.gmra.mxu1 %vm130_vm0, %v962_v26 }
 0x166   :  { %3146 = vmatprep.mubr.msk.f32.mxu1 %vm130_vm0, %v963_v42 }
 0x169   :  { %3147 = vmatmul.mubr.msk.f32.gmra.mxu1 %vm130_vm0, %v964_v27 }
 0x16a   :  { %3149 = vmatprep.mubr.msk.f32.mxu1 %vm130_vm0, %v965_v29 }
 0x16d   :  { %3150 = vmatmul.mubr.msk.f32.gmra.mxu1 %vm130_vm0, %v966_v4 }
 0x1f1   :  { %v3106_v41 = vpop.f32.mrf.mxu1 }
 0x1f2   :  { %v1485_v7 = vadd.f32 %v3106_v41, %v1332_v10 }
 0x1f3   :  { %v1133_v54 = vpop.f32.mrf.mxu1 }
 0x1f4   :  { %v1484_v38 = vadd.f32 %v1327_v31, %v1133_v54  ;;  %v1518_v16 = vsel %vm1516_vm8, %v1485_v7, -inf  ;;  %v1402_v31 = vpop.permute.xlu1 %1401 }
 0x1f5   :  { %v3109_v3 = vpop.f32.mrf.mxu1 }
 0x1f6   :  { %v1517_v50 = vsel %vm1516_vm8, %v1484_v38, -inf  ;;  %v4192_v56 = vadd.f32 %v3109_v3, %v1342_v0 }
 0x1f7   :  { %v1519_v25 = vmax.f32 %v1517_v50, %v1518_v16  ;;  %v1143_v14 = vpop.f32.mrf.mxu1 }
 0x1f8   :  { %v4194_v51 = vadd.f32 %v1337_v49, %v1143_v14  ;;  %v1527_v63 = vsel %vm1516_vm8, %v4192_v56, -inf }
 0x1f9   :  { %v1520_v43 = vrot.slane %v1519_v25, 4  ;;  %v3112_v57 = vpop.f32.mrf.mxu1 }
 0x1fa   :  { %v1526_v28 = vsel %vm1516_vm8, %v4194_v51, -inf  ;;  %v4200_v44 = vadd.f32 %v3112_v57, %v1352_v36 }
 0x1fb   :  { %v1521_v61 = vmax.f32 %v1519_v25, %v1520_v43  ;;  %v1528_v6 = vmax.f32 %v1526_v28, %v1527_v63  ;;  %v1153_v11 = vpop.f32.mrf.mxu1 }
 0x1fc   :  { %v4202_v22 = vadd.f32 %v1347_v48, %v1153_v11  ;;  %v1536_v55 = vsel %vm1516_vm8, %v4200_v44, -inf }
 0x1fd   :  { %v1522_v24 = vrot.slane %v1521_v61, 2  ;;  %v1529_v34 = vrot.slane %v1528_v6, 4  ;;  %v3115_v2 = vpop.f32.mrf.mxu1 }
 0x1fe   :  { %v1535_v35 = vsel %vm1516_vm8, %v4202_v22, -inf  ;;  %v4208_v13 = vadd.f32 %v3115_v2, %v1362_v59  ;;  %v1397_v59 = vpop.permute.xlu0 %1396 }
 0x1ff   :  { %v1523_v15 = vmax.f32 %v1521_v61, %v1522_v24  ;;  %v1530_v62 = vmax.f32 %v1528_v6, %v1529_v34  ;;  %v1537_v17 = vmax.f32 %v1535_v35, %v1536_v55  ;;  %v1163_v53 = vpop.f32.mrf.mxu1 }
 0x200   :  { %v4210_v19 = vadd.f32 %v1357_v37, %v1163_v53  ;;  %v1545_v40 = vsel %vm1516_vm8, %v4208_v13, -inf }
 0x201   :  { %v1524_v1 = vrot.slane %v1523_v15, 1  ;;  %v1531_v30 = vrot.slane %v1530_v62, 2  ;;  %v1538_v21 = vrot.slane %v1537_v17, 4  ;;  %v3118_v23 = vpop.f32.mrf.mxu1 }
 0x202   :  { %v1544_v5 = vsel %vm1516_vm8, %v4210_v19, -inf  ;;  %v4216_v20 = vadd.f32 %v3118_v23, %v1372_v58 }
 0x203   :  { %v1525_v26 = vmax.f32 %v1523_v15, %v1524_v1  ;;  %v1532_v42 = vmax.f32 %v1530_v62, %v1531_v30  ;;  %v1539_v9 = vmax.f32 %v1537_v17, %v1538_v21  ;;  %v1546_v47 = vmax.f32 %v1544_v5, %v1545_v40  ;;  %v1173_v12 = vpop.f32.mrf.mxu1 }
 0x204   :  { %v4218_v27 = vadd.f32 %v1367_v39, %v1173_v12  ;;  %v1554_v10 = vsel %vm1516_vm8, %v4216_v20, -inf }
 0x205   :  { %v1661_v29 = vsub.f32 %v1484_v38, %v1525_v26  ;;  %v1662_v46 = vsub.f32 %v1485_v7, %v1525_v26  ;;  %v1533_v4 = vrot.slane %v1532_v42, 1  ;;  %v1540_v45 = vrot.slane %v1539_v9, 2  ;;  %v3121_v49 = vpop.f32.mrf.mxu1 }
 0x206   :  { %v1547_v0 = vrot.slane %v1546_v47, 4  ;;  %v1553_v36 = vsel %vm1516_vm8, %v4218_v27, -inf  ;;  %v4224_v48 = vadd.f32 %v3121_v49, %v1382_v8 }
 0x207   :  { %v1693_v37 = vmul.f32 1.442695, %v1661_v29  ;;  %v1695_v41 = vmul.f32 1.442695, %v1662_v46  ;;  %v1534_v54 = vmax.f32 %v1532_v42, %v1533_v4  ;;  %v1541_v58 = vmax.f32 %v1539_v9, %v1540_v45  ;;  %v1183_v38 = vpop.f32.mrf.mxu1 }
 0x208   :  { %v1548_v7 = vmax.f32 %v1546_v47, %v1547_v0  ;;  %v1555_v39 = vmax.f32 %v1553_v36, %v1554_v10  ;;  %v1563_v3 = vsel %vm1516_vm8, %v4224_v48, -inf  ;;  %v4228_v16 = vadd.f32 %v1377_v60, %v1183_v38  ;;  %v1412_v60 = vpop.permute.xlu1 %1411 }
 0x209   :  { %3233 = vpow2.f32 %v1693_v37  ;;  %v1663_v50 = vsub.f32 %v4194_v51, %v1534_v54  ;;  %v1664_v25 = vsub.f32 %v4192_v56, %v1534_v54  ;;  %v1542_v14 = vrot.slane %v1541_v58, 1  ;;  %v3124_v43 = vpop.f32.mrf.mxu1  ;;  %v1407_v56 = vpop.permute.xlu0 %1406 }
 0x20a   :  { %3235 = vpow2.f32 %v1695_v41  ;;  %v1549_v57 = vrot.slane %v1548_v7, 2  ;;  %v1556_v8 = vrot.slane %v1555_v39, 4  ;;  %v1562_v63 = vsel %vm1516_vm8, %v4228_v16, -inf }
 0x20b   :  { %v1697_v28 = vmul.f32 1.442695, %v1663_v50  ;;  %v1699_v61 = vmul.f32 1.442695, %v1664_v25  ;;  %v1543_v6 = vmax.f32 %v1541_v58, %v1542_v14  ;;  %v1564_v11 = vmax.f32 %v1562_v63, %v1563_v3  ;;  %v1193_v24 = vpop.f32.mrf.mxu1 }
 0x20c   :  { %v1550_v34 = vmax.f32 %v1548_v7, %v1549_v57  ;;  %v1557_v2 = vmax.f32 %v1555_v39, %v1556_v8  ;;  %v4234_v55 = vadd.f32 %v3124_v43, %v1392_v18  ;;  %v4236_v51 = vadd.f32 %v1387_v52, %v1193_v24  ;;  %v1422_v12 = vpop.permute.xlu1 %1421 }
 0x20d   :  { %3237 = vpow2.f32 %v1697_v28  ;;  %v1665_v35 = vsub.f32 %v4202_v22, %v1543_v6  ;;  %v1666_v15 = vsub.f32 %v4200_v44, %v1543_v6  ;;  %v1565_v62 = vrot.slane %v1564_v11, 4  ;;  %v3127_v17 = vpop.f32.mrf.mxu1  ;;  %v1417_v45 = vpop.permute.xlu0 %1416 }
 0x20e   :  { %3239 = vpow2.f32 %v1699_v61  ;;  %v1551_v53 = vrot.slane %v1550_v34, 1  ;;  %v1558_v1 = vrot.slane %v1557_v2, 2  ;;  %v1572_v30 = vsel %vm1516_vm8, %v4234_v55, -inf }
 0x20f   :  { %v1701_v21 = vmul.f32 1.442695, %v1665_v35  ;;  %v1703_v23 = vmul.f32 1.442695, %v1666_v15  ;;  %v1566_v18 = vmax.f32 %v1564_v11, %v1565_v62  ;;  %v1571_v52 = vsel %vm1516_vm8, %v4236_v51, -inf  ;;  %v1203_v40 = vpop.f32.mrf.mxu1 }
 0x210   :  { %v1552_v5 = vmax.f32 %v1550_v34, %v1551_v53  ;;  %v1559_v26 = vmax.f32 %v1557_v2, %v1558_v1  ;;  %v1573_v22 = vmax.f32 %v1571_v52, %v1572_v30  ;;  %v4244_v42 = vadd.f32 %v3127_v17, %v1402_v31  ;;  %v1432_v28 = vpop.permute.xlu1 %1431 }
 0x211   :  { %3241 = vpow2.f32 %v1701_v21  ;;  %v1567_v44 = vrot.slane %v1566_v18, 2  ;;  %v4246_v9 = vadd.f32 %v1397_v59, %v1203_v40  ;;  %v3130_v47 = vpop.f32.mrf.mxu1 }
 0x212   :  { %3243 = vpow2.f32 %v1703_v23  ;;  %v1667_v29 = vsub.f32 %v4210_v19, %v1552_v5  ;;  %v1668_v46 = vsub.f32 %v4208_v13, %v1552_v5  ;;  %v1560_v4 = vrot.slane %v1559_v26, 1 }
 0x213   :  { %v1568_v49 = vmax.f32 %v1566_v18, %v1567_v44  ;;  %v1574_v0 = vrot.slane %v1573_v22, 4  ;;  %v1581_v10 = vsel %vm1516_vm8, %v4244_v42, -inf  ;;  %v1580_v31 = vsel %vm1516_vm8, %v4246_v9, -inf  ;;  %v1213_v36 = vpop.f32.mrf.mxu1 }
 0x214   :  { %v1705_v59 = vmul.f32 1.442695, %v1667_v29  ;;  %v1707_v37 = vmul.f32 1.442695, %v1668_v46  ;;  %v1561_v41 = vmax.f32 %v1559_v26, %v1560_v4  ;;  %v1582_v54 = vmax.f32 %v1580_v31, %v1581_v10 }
 0x215   :  { %v1569_v58 = vrot.slane %v1568_v49, 1  ;;  %v1575_v38 = vmax.f32 %v1573_v22, %v1574_v0  ;;  %v4254_v19 = vadd.f32 %v3130_v47, %v1412_v60  ;;  %v4256_v13 = vadd.f32 %v1407_v56, %v1213_v36  ;;  %v3133_v7 = vpop.f32.mrf.mxu1  ;;  %v1442_v47 = vpop.permute.xlu1 %1441 }
 0x216   :  { %v4258_v39 = vpop.eup %3233  ;;  %3245 = vpow2.f32 %v1705_v59  ;;  %v1669_v3 = vsub.f32 %v4218_v27, %v1561_v41  ;;  %v1670_v50 = vsub.f32 %v4216_v20, %v1561_v41  ;;  %v1583_v25 = vrot.slane %v1582_v54, 4  ;;  %v1427_v27 = vpop.permute.xlu0 %1426 }
 0x217   :  { %v4262_v14 = vpop.eup %3235  ;;  %v1757_v43 = vsel %vm1516_vm8, %v4258_v39, 0.0  ;;  %3247 = vpow2.f32 %v1707_v37  ;;  %v1570_v57 = vmax.f32 %v1568_v49, %v1569_v58  ;;  %v1576_v8 = vrot.slane %v1575_v38, 2  ;;  %v1223_v63 = vpop.f32.mrf.mxu1 }
 0x218   :  { %v1758_v61 = vsel %vm1516_vm8, %v4262_v14, 0.0  ;;  %v1709_v6 = vmul.f32 1.442695, %v1669_v3  ;;  %v1711_v11 = vmul.f32 1.442695, %v1670_v50  ;;  %v1584_v24 = vmax.f32 %v1582_v54, %v1583_v25 }
 0x219   :  { %v4268_v60 = vadd.f32 %v1758_v61, %v1757_v43  ;;  %v1671_v20 = vsub.f32 %v4228_v16, %v1570_v57  ;;  %v1672_v34 = vsub.f32 %v4224_v48, %v1570_v57  ;;  %v1577_v2 = vmax.f32 %v1575_v38, %v1576_v8  ;;  %v3136_v56 = vpop.f32.mrf.mxu1 }
 0x21a   :  { %v4272_v35 = vpop.eup %3237  ;;  %3249 = vpow2.f32 %v1709_v6  ;;  %v1585_v15 = vrot.slane %v1584_v24, 2  ;;  %v1590_v62 = vsel %vm1516_vm8, %v4254_v19, -inf  ;;  %v1589_v17 = vsel %vm1516_vm8, %v4256_v13, -inf  ;;  %v1437_v0 = vpop.permute.xlu0 %1436 }
 0x21b   :  { %v4278_v53 = vpop.eup %3239  ;;  %v1766_v1 = vsel %vm1516_vm8, %v4272_v35, 0.0  ;;  %3251 = vpow2.f32 %v1711_v11  ;;  %v1713_v16 = vmul.f32 1.442695, %v1671_v20  ;;  %v1715_v48 = vmul.f32 1.442695, %v1672_v34  ;;  %v1233_v30 = vpop.f32.mrf.mxu1 }
 0x21c   :  { %v1767_v21 = vsel %vm1516_vm8, %v4278_v53, 0.0  ;;  %v1578_v23 = vrot.slane %v1577_v2, 1  ;;  %v1586_v18 = vmax.f32 %v1584_v24, %v1585_v15  ;;  %v1591_v52 = vmax.f32 %v1589_v17, %v1590_v62  ;;  %v1452_v24 = vpop.permute.xlu1 %1451 }
 0x21d   :  { %v4284_v40 = vadd.f32 %v1767_v21, %v1766_v1  ;;  %3253 = vpow2.f32 %v1713_v16  ;;  %v4286_v5 = vadd.f32 %v3133_v7, %v1422_v12  ;;  %v4288_v26 = vadd.f32 %v1417_v45, %v1223_v63  ;;  %v3139_v22 = vpop.f32.mrf.mxu1 }
 0x21e   :  { %v4290_v44 = vpop.eup %3241  ;;  %3255 = vpow2.f32 %v1715_v48  ;;  %v1579_v29 = vmax.f32 %v1577_v2, %v1578_v23  ;;  %v1587_v46 = vrot.slane %v1586_v18, 1  ;;  %v1592_v4 = vrot.slane %v1591_v52, 4  ;;  %v1447_v2 = vpop.permute.xlu0 %1446 }
 0x21f   :  { %v4292_v49 = vpop.eup %3243  ;;  %v1775_v10 = vsel %vm1516_vm8, %v4290_v44, 0.0  ;;  %v1599_v12 = vsel %vm1516_vm8, %v4286_v5, -inf  ;;  %v1598_v45 = vsel %vm1516_vm8, %v4288_v26, -inf  ;;  %v4300_v31 = vadd.f32 %v3136_v56, %v1432_v28  ;;  %v1243_v36 = vpop.f32.mrf.mxu1 }
 0x220   :  { %v1776_v59 = vsel %vm1516_vm8, %v4292_v49, 0.0  ;;  %v1673_v37 = vsub.f32 %v4236_v51, %v1579_v29  ;;  %v1674_v41 = vsub.f32 %v4234_v55, %v1579_v29  ;;  %v1588_v54 = vmax.f32 %v1586_v18, %v1587_v46 }
 0x221   :  { %v4306_v58 = vadd.f32 %v1776_v59, %v1775_v10  ;;  %v1593_v38 = vmax.f32 %v1591_v52, %v1592_v4  ;;  %v1600_v7 = vmax.f32 %v1598_v45, %v1599_v12  ;;  %v1608_v3 = vsel %vm1516_vm8, %v4300_v31, -inf  ;;  %v3142_v50 = vpop.f32.mrf.mxu1 }
 0x222   :  { %v1717_v25 = vmul.f32 1.442695, %v1673_v37  ;;  %v1719_v43 = vmul.f32 1.442695, %v1674_v41  ;;  %v1675_v57 = vsub.f32 %v4246_v9, %v1588_v54  ;;  %v1676_v8 = vsub.f32 %v4244_v42, %v1588_v54  ;;  %v1462_v37 = vpop.permute.xlu1 %1461 }
 0x223   :  { %v4312_v63 = vpop.eup %3245  ;;  %v1594_v51 = vrot.slane %v1593_v38, 2  ;;  %v1601_v28 = vrot.slane %v1600_v7, 4  ;;  %v4314_v55 = vadd.f32 %v1427_v27, %v1233_v30  ;;  %v4316_v61 = vadd.f32 %v3139_v22, %v1442_v47  ;;  %v1253_v6 = vpop.f32.mrf.mxu1 }
 0x224   :  { %v4318_v11 = vpop.eup %3247  ;;  %v1784_v20 = vsel %vm1516_vm8, %v4312_v63, 0.0  ;;  %3257 = vpow2.f32 %v1717_v25  ;;  %v1721_v34 = vmul.f32 1.442695, %v1675_v57  ;;  %v1723_v9 = vmul.f32 1.442695, %v1676_v8 }
 0x225   :  { %v1785_v42 = vsel %vm1516_vm8, %v4318_v11, 0.0  ;;  %3259 = vpow2.f32 %v1719_v43  ;;  %v1595_v56 = vmax.f32 %v1593_v38, %v1594_v51  ;;  %v1602_v27 = vmax.f32 %v1600_v7, %v1601_v28  ;;  %v3145_v15 = vpop.f32.mrf.mxu1  ;;  %v1457_v7 = vpop.permute.xlu0 %1456 }
 0x226   :  { %v4324_v62 = vadd.f32 %v1785_v42, %v1784_v20  ;;  %3261 = vpow2.f32 %v1721_v34  ;;  %v1607_v17 = vsel %vm1516_vm8, %v4314_v55, -inf  ;;  %v1617_v1 = vsel %vm1516_vm8, %v4316_v61, -inf }
 0x227   :  { %v4330_v16 = vpop.eup %3249  ;;  %3263 = vpow2.f32 %v1723_v9  ;;  %v1596_v48 = vrot.slane %v1595_v56, 1  ;;  %v1603_v30 = vrot.slane %v1602_v27, 2  ;;  %v1609_v21 = vmax.f32 %v1607_v17, %v1608_v3  ;;  %v1263_v23 = vpop.f32.mrf.mxu1 }
 0x228   :  { %v4332_v18 = vpop.eup %3251  ;;  %v1793_v52 = vsel %vm1516_vm8, %v4330_v16, 0.0  ;;  %v4336_v22 = vadd.f32 %v1437_v0, %v1243_v36  ;;  %v4338_v47 = vadd.f32 %v3142_v50, %v1452_v24  ;;  %v4340_v29 = vadd.f32 %v1447_v2, %v1253_v6 }
 0x229   :  { %v1794_v46 = vsel %vm1516_vm8, %v4332_v18, 0.0  ;;  %v1597_v4 = vmax.f32 %v1595_v56, %v1596_v48  ;;  %v1604_v10 = vmax.f32 %v1602_v27, %v1603_v30  ;;  %v1610_v12 = vrot.slane %v1609_v21, 4  ;;  %v3148_v45 = vpop.f32.mrf.mxu1 }
 0x22a   :  { %v4344_v59 = vpop.eup %3253  ;;  %v4346_v41 = vadd.f32 %v1794_v46, %v1793_v52  ;;  %v1616_v0 = vsel %vm1516_vm8, %v4336_v22, -inf  ;;  %v1626_v36 = vsel %vm1516_vm8, %v4338_v47, -inf  ;;  %v1625_v54 = vsel %vm1516_vm8, %v4340_v29, -inf  ;;  %v1467_v46 = vpop.permute.xlu0 %1466 }
 0x22b   :  { %v4354_v38 = vpop.eup %3255  ;;  %v1802_v3 = vsel %vm1516_vm8, %v4344_v59, 0.0  ;;  %v1677_v50 = vsub.f32 %v4256_v13, %v1597_v4  ;;  %v1678_v25 = vsub.f32 %v4254_v19, %v1597_v4  ;;  %v1605_v43 = vrot.slane %v1604_v10, 1  ;;  %v1273_v9 = vpop.f32.mrf.mxu1 }
 0x22c   :  { %v1803_v57 = vsel %vm1516_vm8, %v4354_v38, 0.0  ;;  %v1611_v8 = vmax.f32 %v1609_v21, %v1610_v12  ;;  %v1618_v51 = vmax.f32 %v1616_v0, %v1617_v1  ;;  %v1627_v28 = vmax.f32 %v1625_v54, %v1626_v36  ;;  %v1472_v1 = vpop.permute.xlu1 %1471 }
 0x22d   :  { %v4362_v6 = vadd.f32 %v1803_v57, %v1802_v3  ;;  %v1725_v24 = vmul.f32 1.442695, %v1677_v50  ;;  %v1727_v20 = vmul.f32 1.442695, %v1678_v25  ;;  %v1606_v34 = vmax.f32 %v1604_v10, %v1605_v43  ;;  %v3151_v12 = vpop.f32.mrf.mxu1 }
 0x22e   :  { %v1612_v2 = vrot.slane %v1611_v8, 2  ;;  %v1619_v42 = vrot.slane %v1618_v51, 4  ;;  %v1628_v56 = vrot.slane %v1627_v28, 4  ;;  %v4364_v27 = vadd.f32 %v3145_v15, %v1462_v37 }
 0x22f   :  { %3265 = vpow2.f32 %v1725_v24  ;;  %v1679_v19 = vsub.f32 %v4288_v26, %v1606_v34  ;;  %v1680_v13 = vsub.f32 %v4286_v5, %v1606_v34  ;;  %v4368_v17 = vadd.f32 %v1457_v7, %v1263_v23  ;;  %v1283_v34 = vpop.f32.mrf.mxu1 }
 0x230   :  { %3267 = vpow2.f32 %v1727_v20  ;;  %v1613_v48 = vmax.f32 %v1611_v8, %v1612_v2  ;;  %v1620_v30 = vmax.f32 %v1618_v51, %v1619_v42  ;;  %v1629_v21 = vmax.f32 %v1627_v28, %v1628_v56 }
 0x231   :  { %v4370_v52 = vpop.eup %3257  ;;  %v1729_v4 = vmul.f32 1.442695, %v1679_v19  ;;  %v1731_v10 = vmul.f32 1.442695, %v1680_v13  ;;  %v1635_v15 = vsel %vm1516_vm8, %v4364_v27, -inf  ;;  %v1634_v26 = vsel %vm1516_vm8, %v4368_v17, -inf  ;;  %v1482_v19 = vpop.permute.xlu1 %1481 }
 0x232   :  { %v4376_v5 = vpop.eup %3259  ;;  %v1811_v23 = vsel %vm1516_vm8, %v4370_v52, 0.0  ;;  %v1614_v37 = vrot.slane %v1613_v48, 1  ;;  %v1621_v0 = vrot.slane %v1620_v30, 2  ;;  %v1630_v36 = vrot.slane %v1629_v21, 2  ;;  %v1477_v13 = vpop.permute.xlu0 %1476 }
 0x233   :  { %v4380_v54 = vpop.eup %3261  ;;  %v1812_v7 = vsel %vm1516_vm8, %v4376_v5, 0.0  ;;  %3269 = vpow2.f32 %v1729_v4  ;;  %v1636_v3 = vmax.f32 %v1634_v26, %v1635_v15  ;;  %v4384_v50 = vadd.f32 %v3148_v45, %v1472_v1 }
 0x234   :  { %v4386_v25 = vpop.eup %3263  ;;  %v4388_v43 = vadd.f32 %v1812_v7, %v1811_v23  ;;  %v1820_v57 = vsel %vm1516_vm8, %v4380_v54, 0.0  ;;  %3271 = vpow2.f32 %v1731_v10  ;;  %v1615_v8 = vmax.f32 %v1613_v48, %v1614_v37 }
 0x235   :  { %v1821_v51 = vsel %vm1516_vm8, %v4386_v25, 0.0  ;;  %v1622_v28 = vmax.f32 %v1620_v30, %v1621_v0  ;;  %v1631_v24 = vmax.f32 %v1629_v21, %v1630_v36  ;;  %v1637_v20 = vrot.slane %v1636_v3, 4 }
 0x236   :  { %v4394_v2 = vadd.f32 %v1821_v51, %v1820_v57  ;;  %v1681_v45 = vsub.f32 %v4314_v55, %v1615_v8  ;;  %v1682_v42 = vsub.f32 %v4300_v31, %v1615_v8  ;;  %v1644_v56 = vsel %vm1516_vm8, %v4384_v50, -inf }
 0x237   :  { %v1623_v1 = vrot.slane %v1622_v28, 1  ;;  %v1632_v48 = vrot.slane %v1631_v24, 1  ;;  %v1638_v4 = vmax.f32 %v1636_v3, %v1637_v20  ;;  %v4400_v10 = vadd.f32 %v1467_v46, %v1273_v9 }
 0x238   :  { %v1733_v30 = vmul.f32 1.442695, %v1681_v45  ;;  %v1735_v21 = vmul.f32 1.442695, %v1682_v42  ;;  %v4402_v15 = vadd.f32 %v3151_v12, %v1482_v19  ;;  %v4404_v26 = vadd.f32 %v1477_v13, %v1283_v34 }
 0x239   :  { %v1624_v23 = vmax.f32 %v1622_v28, %v1623_v1  ;;  %v1633_v55 = vmax.f32 %v1631_v24, %v1632_v48  ;;  %v1639_v37 = vrot.slane %v1638_v4, 2  ;;  %v1643_v31 = vsel %vm1516_vm8, %v4400_v10, -inf }
 0x23a   :  { %3273 = vpow2.f32 %v1733_v30  ;;  %v1645_v0 = vmax.f32 %v1643_v31, %v1644_v56  ;;  %v1653_v36 = vsel %vm1516_vm8, %v4402_v15, -inf  ;;  %v1652_v9 = vsel %vm1516_vm8, %v4404_v26, -inf }
 0x23b   :  { %3275 = vpow2.f32 %v1735_v21  ;;  %v1683_v46 = vsub.f32 %v4336_v22, %v1624_v23  ;;  %v1684_v12 = vsub.f32 %v4316_v61, %v1624_v23  ;;  %v1685_v7 = vsub.f32 %v4340_v29, %v1633_v55 }
 0x23c   :  { %v4415_v3 = vpop.eup %3265  ;;  %v1686_v57 = vsub.f32 %v4338_v47, %v1633_v55  ;;  %v1640_v8 = vmax.f32 %v1638_v4, %v1639_v37  ;;  %v1646_v51 = vrot.slane %v1645_v0, 4  ;;  %v1654_v28 = vmax.f32 %v1652_v9, %v1653_v36 }
 0x23d   :  { %v4418_v24 = vpop.eup %3267  ;;  %v1829_v20 = vsel %vm1516_vm8, %v4415_v3, 0.0  ;;  %v1737_v34 = vmul.f32 1.442695, %v1683_v46  ;;  %v1739_v45 = vmul.f32 1.442695, %v1684_v12  ;;  %v1760_v22 = vrot.slane %v4268_v60, 4 }
 0x23e   :  { %v1830_v61 = vsel %vm1516_vm8, %v4418_v24, 0.0  ;;  %v1741_v29 = vmul.f32 1.442695, %v1685_v7  ;;  %v1743_v42 = vmul.f32 1.442695, %v1686_v57  ;;  %v1641_v56 = vrot.slane %v1640_v8, 1 }
 0x23f   :  { %v4425_v19 = vadd.f32 %v1830_v61, %v1829_v20  ;;  %3277 = vpow2.f32 %v1737_v34  ;;  %v1647_v47 = vmax.f32 %v1645_v0, %v1646_v51  ;;  %v1655_v13 = vrot.slane %v1654_v28, 4 }
 0x240   :  { %v4427_v1 = vpop.eup %3269  ;;  %3279 = vpow2.f32 %v1739_v45  ;;  %v1642_v48 = vmax.f32 %v1640_v8, %v1641_v56  ;;  %v1761_v4 = vadd.f32 %v1760_v22, %v4268_v60  ;;  %v1769_v30 = vrot.slane %v4284_v40, 4 }
 0x241   :  { %v4431_v21 = vpop.eup %3271  ;;  %v1838_v23 = vsel %vm1516_vm8, %v4427_v1, 0.0  ;;  %3281 = vpow2.f32 %v1741_v29  ;;  %v1648_v55 = vrot.slane %v1647_v47, 2  ;;  %v1656_v37 = vmax.f32 %v1654_v28, %v1655_v13 }
 0x242   :  { %v1839_v31 = vsel %vm1516_vm8, %v4431_v21, 0.0  ;;  %3283 = vpow2.f32 %v1743_v42  ;;  %v1687_v0 = vsub.f32 %v4368_v17, %v1642_v48  ;;  %v1688_v36 = vsub.f32 %v4364_v27, %v1642_v48 }
 0x243   :  { %v4439_v9 = vadd.f32 %v1839_v31, %v1838_v23  ;;  %v1649_v60 = vmax.f32 %v1647_v47, %v1648_v55  ;;  %v1657_v46 = vrot.slane %v1656_v37, 2  ;;  %v1762_v12 = vrot.slane %v1761_v4, 2 }
 0x244   :  { %v1745_v7 = vmul.f32 1.442695, %v1687_v0  ;;  %v1747_v57 = vmul.f32 1.442695, %v1688_v36  ;;  %v1770_v8 = vadd.f32 %v1769_v30, %v4284_v40  ;;  %v1778_v51 = vrot.slane %v4306_v58, 4 }
 0x245   :  { %v1650_v28 = vrot.slane %v1649_v60, 1  ;;  %v1658_v20 = vmax.f32 %v1656_v37, %v1657_v46  ;;  %v1763_v34 = vadd.f32 %v1762_v12, %v1761_v4  ;;  %v1787_v45 = vrot.slane %v4324_v62, 4 }
 0x246   :  { %3285 = vpow2.f32 %v1745_v7  ;;  %v1771_v17 = vrot.slane %v1770_v8, 2  ;;  %v1779_v27 = vadd.f32 %v1778_v51, %v4306_v58  ;;  %v1796_v22 = vrot.slane %v4346_v41, 4 }
 0x247   :  { %v4446_v61 = vpop.eup %3273  ;;  %3287 = vpow2.f32 %v1747_v57  ;;  %v1651_v29 = vmax.f32 %v1649_v60, %v1650_v28  ;;  %v1659_v42 = vrot.slane %v1658_v20, 1  ;;  %v1764_v56 = vrot.slane %v1763_v34, 1 }
 0x248   :  { %v4448_v40 = vpop.eup %3275  ;;  %v1847_v47 = vsel %vm1516_vm8, %v4446_v61, 0.0  ;;  %v1772_v13 = vadd.f32 %v1771_v17, %v1770_v8  ;;  %v1780_v48 = vrot.slane %v1779_v27, 2  ;;  %v1788_v4 = vadd.f32 %v1787_v45, %v4324_v62 }
 0x249   :  { %v1848_v58 = vsel %vm1516_vm8, %v4448_v40, 0.0  ;;  %v1689_v30 = vsub.f32 %v4400_v10, %v1651_v29  ;;  %v1690_v23 = vsub.f32 %v4384_v50, %v1651_v29  ;;  %v1660_v55 = vmax.f32 %v1658_v20, %v1659_v42 }
 0x24a   :  { %v4457_v37 = vadd.f32 %v1848_v58, %v1847_v47  ;;  %v4459_v31 = vadd.f32 %v1764_v56, %v1763_v34  ;;  %v1773_v0 = vrot.slane %v1772_v13, 1  ;;  %v1781_v36 = vadd.f32 %v1780_v48, %v1779_v27 }
 0x24b   :  { %v1749_v60 = vmul.f32 1.442695, %v1689_v30  ;;  %v1751_v46 = vmul.f32 1.442695, %v1690_v23  ;;  %v1691_v12 = vsub.f32 %v4404_v26, %v1660_v55  ;;  %v1692_v62 = vsub.f32 %v4402_v15, %v1660_v55 }
 0x24c   :  { %v4463_v7 = vpop.eup %3277  ;;  %3289 = vrcp.f32 %v4459_v31  ;;  %v4466_v10 = vadd.f32 %v1773_v0, %v1772_v13  ;;  %v1782_v50 = vrot.slane %v1781_v36, 1  ;;  %v1789_v57 = vrot.slane %v1788_v4, 2 }
 0x24d   :  { %v4468_v8 = vpop.eup %3279  ;;  %v1856_v51 = vsel %vm1516_vm8, %v4463_v7, 0.0  ;;  %3291 = vpow2.f32 %v1749_v60  ;;  %v1753_v28 = vmul.f32 1.442695, %v1691_v12  ;;  %v1755_v20 = vmul.f32 1.442695, %v1692_v62 }
 0x24e   :  { %v4472_v34 = vpop.eup %3281  ;;  %v1857_v15 = vsel %vm1516_vm8, %v4468_v8, 0.0  ;;  %3293 = vpow2.f32 %v1751_v46  ;;  %v4476_v26 = vadd.f32 %v1782_v50, %v1781_v36  ;;  %v1790_v45 = vadd.f32 %v1789_v57, %v1788_v4 }
 0x24f   :  { %v4478_v17 = vpop.eup %3283  ;;  %v4480_v27 = vadd.f32 %v1857_v15, %v1856_v51  ;;  %v1865_v29 = vsel %vm1516_vm8, %v4472_v34, 0.0  ;;  %3295 = vpow2.f32 %v1753_v28  ;;  %v1797_v42 = vadd.f32 %v1796_v22, %v4346_v41 }
 0x250   :  { %v1866_v56 = vsel %vm1516_vm8, %v4478_v17, 0.0  ;;  %3297 = vpow2.f32 %v1755_v20  ;;  %v1791_v47 = vrot.slane %v1790_v45, 1  ;;  %v1805_v13 = vrot.slane %v4362_v6, 4 }
 0x251   :  { %v4488_v48 = vadd.f32 %v1866_v56, %v1865_v29  ;;  %3299 = vrcp.f32 %v4466_v10  ;;  %v1798_v4 = vrot.slane %v1797_v42, 2  ;;  %v1814_v58 = vrot.slane %v4388_v43, 4 }
 0x252   :  { %3301 = vrcp.f32 %v4476_v26  ;;  %v4493_v30 = vadd.f32 %v1791_v47, %v1790_v45  ;;  %v1806_v41 = vadd.f32 %v1805_v13, %v4362_v6  ;;  %v1823_v22 = vrot.slane %v4394_v2, 4 }
 0x253   :  { %v4497_v23 = vpop.eup %3285  ;;  %v1799_v55 = vadd.f32 %v1798_v4, %v1797_v42  ;;  %v1815_v0 = vadd.f32 %v1814_v58, %v4388_v43  ;;  %v1832_v36 = vrot.slane %v4425_v19, 4  ;;  %v1841_v60 = vrot.slane %v4439_v9, 4 }
 0x254   :  { %v4502_v46 = vpop.eup %3287  ;;  %v1874_v12 = vsel %vm1516_vm8, %v4497_v23, 0.0  ;;  %3303 = vrcp.f32 %v4493_v30  ;;  %v1807_v62 = vrot.slane %v1806_v41, 2  ;;  %v1824_v6 = vadd.f32 %v1823_v22, %v4394_v2 }
 0x255   :  { %v1875_v50 = vsel %vm1516_vm8, %v4502_v46, 0.0  ;;  %v1800_v57 = vrot.slane %v1799_v55, 1  ;;  %v1816_v51 = vrot.slane %v1815_v0, 2  ;;  %v1833_v43 = vadd.f32 %v1832_v36, %v4425_v19 }
 0x256   :  { %v4511_v28 = vadd.f32 %v1875_v50, %v1874_v12  ;;  %v1808_v20 = vadd.f32 %v1807_v62, %v1806_v41  ;;  %v1825_v15 = vrot.slane %v1824_v6, 2  ;;  %v1842_v45 = vadd.f32 %v1841_v60, %v4439_v9 }
 0x257   :  { %v4514_v29 = vadd.f32 %v1800_v57, %v1799_v55  ;;  %v1817_v42 = vadd.f32 %v1816_v51, %v1815_v0  ;;  %v1834_v56 = vrot.slane %v1833_v43, 2  ;;  %v1850_v47 = vrot.slane %v4457_v37, 4 }
 0x258   :  { %v1809_v2 = vrot.slane %v1808_v20, 1  ;;  %v1826_v13 = vadd.f32 %v1825_v15, %v1824_v6  ;;  %v1843_v4 = vrot.slane %v1842_v45, 2  ;;  %v1859_v58 = vrot.slane %v4480_v27, 4 }
 0x259   :  { %v3290_v22 = vpop.eup %3289  ;;  %3305 = vrcp.f32 %v4514_v29  ;;  %v1818_v19 = vrot.slane %v1817_v42, 1  ;;  %v1835_v36 = vadd.f32 %v1834_v56, %v1833_v43  ;;  %v1851_v41 = vadd.f32 %v1850_v47, %v4457_v37 }
 0x25a   :  { %v4520_v12 = vpop.eup %3291  ;;  %v1917_v9 = vmul.f32 %v3290_v22, %v4459_v31  ;;  %v4523_v55 = vadd.f32 %v1809_v2, %v1808_v20  ;;  %v1827_v0 = vrot.slane %v1826_v13, 1  ;;  %v1844_v60 = vadd.f32 %v1843_v4, %v1842_v45 }
 0x25b   :  { %v4525_v62 = vpop.eup %3293  ;;  %v1883_v6 = vsel %vm1516_vm8, %v4520_v12, 0.0  ;;  %v4529_v50 = vadd.f32 %v1818_v19, %v1817_v42  ;;  %v1836_v57 = vrot.slane %v1835_v36, 1  ;;  %v1852_v51 = vrot.slane %v1851_v41, 2 }
 0x25c   :  { %v4531_v43 = vpop.eup %3295  ;;  %v1884_v37 = vsel %vm1516_vm8, %v4525_v62, 0.0  ;;  %v1933_v15 = vsub.f32 2.0, %v1917_v9  ;;  %3307 = vrcp.f32 %v4523_v55  ;;  %v4536_v31 = vadd.f32 %v1827_v0, %v1826_v13 }
 0x25d   :  { %v4538_v20 = vpop.eup %3297  ;;  %v1885_v45 = vadd.f32 %v1884_v37, %v1883_v6  ;;  %v1892_v56 = vsel %vm1516_vm8, %v4531_v43, 0.0  ;;  %3309 = vrcp.f32 %v4529_v50  ;;  %v4543_v42 = vadd.f32 %v1836_v57, %v1835_v36 }
 0x25e   :  { %4752 = vst [vmem:[#allocation17_spill] sm:$0xff] %v4538_v20  ;;  %v3300_v47 = vpop.eup %3299  ;;  %v1893_v2 = vsel %vm1516_vm8, %v4538_v20, 0.0  ;;  %v1949_v4 = vmul.f32 %v3290_v22, %v1933_v15  ;;  %3311 = vrcp.f32 %v4536_v31  ;;  %v1845_v19 = vrot.slane %v1844_v60, 1 }
 0x25f   :  { %v3302_v13 = vpop.eup %3301  ;;  %v1894_v9 = vadd.f32 %v1893_v2, %v1892_v56  ;;  %v1918_v0 = vmul.f32 %v3300_v47, %v4466_v10  ;;  %3313 = vrcp.f32 %v4543_v42  ;;  %v1853_v6 = vadd.f32 %v1852_v51, %v1851_v41 }
 0x260   :  { %v1965_v37 = vmul.f32 %v4258_v39, %v1949_v4  ;;  %v1966_v36 = vmul.f32 %v4262_v14, %v1949_v4  ;;  %v1919_v57 = vmul.f32 %v3302_v13, %v4476_v26  ;;  %v4553_v33 = vadd.f32 %v1845_v19, %v1844_v60 }
 0x261   :  { %v3304_v32 = vpop.eup %3303  ;;  %v1934_v22 = vsub.f32 2.0, %v1918_v0  ;;  %v1854_v15 = vrot.slane %v1853_v6, 1  ;;  %v1860_v20 = vadd.f32 %v1859_v58, %v4480_v27  ;;  %v1868_v56 = vrot.slane %v4488_v48, 4 }
 0x262   :  { %3154 = vmatprep.mubr.msk.f32.mxu0 %vm1516_vm8, %v1965_v37  ;;  %v1935_v10 = vsub.f32 2.0, %v1919_v57  ;;  %v1920_v41 = vmul.f32 %v3304_v32, %v4493_v30  ;;  %3315 = vrcp.f32 %v4553_v33  ;;  %v1877_v39 = vrot.slane %v4511_v28, 4 }
 0x263   :  { %3155 = vmatmul.mubr.msk.f32.vlgmr.msra.gmra.mxu0 %vm1516_vm8, %v1966_v36  ;;  %v1950_v14 = vmul.f32 %v3300_v47, %v1934_v22  ;;  %v4562_v26 = vadd.f32 %v1854_v15, %v1853_v6  ;;  %v1861_v60 = vrot.slane %v1860_v20, 2  ;;  %v1869_v51 = vadd.f32 %v1868_v56, %v4488_v48 }
 0x264   :  { %v1951_v27 = vmul.f32 %v3302_v13, %v1935_v10  ;;  %v1936_v58 = vsub.f32 2.0, %v1920_v41  ;;  %v1878_v2 = vadd.f32 %v1877_v39, %v4511_v28  ;;  %v1886_v4 = vrot.slane %v1885_v45, 4 }
 0x265   :  { %v1967_v19 = vmul.f32 %v4272_v35, %v1950_v14  ;;  %v1968_v30 = vmul.f32 %v4278_v53, %v1950_v14  ;;  %v1862_v0 = vadd.f32 %v1861_v60, %v1860_v20  ;;  %3317 = vrcp.f32 %v4562_v26 }
 0x266   :  { %v3306_v37 = vpop.eup %3305  ;;  %v1969_v57 = vmul.f32 %v4290_v44, %v1951_v27  ;;  %v1952_v36 = vmul.f32 %v3304_v32, %v1936_v58  ;;  %v1870_v47 = vrot.slane %v1869_v51, 2  ;;  %v1879_v6 = vrot.slane %v1878_v2, 2 }
 0x267   :  { %3157 = vmatprep.mubr.msk.f32.mxu0 %vm1516_vm8, %v1967_v19  ;;  %v1921_v48 = vmul.f32 %v3306_v37, %v4514_v29  ;;  %v1863_v13 = vrot.slane %v1862_v0, 1  ;;  %v1887_v28 = vadd.f32 %v1886_v4, %v1885_v45  ;;  %v1970_v35 = vmul.f32 %v4292_v49, %v1951_v27 }
 0x268   :  { %3158 = vmatmul.mubr.msk.f32.gmra.mxu0 %vm1516_vm8, %v1968_v30  ;;  %v1971_v53 = vmul.f32 %v4312_v63, %v1952_v36  ;;  %v1871_v20 = vadd.f32 %v1870_v47, %v1869_v51  ;;  %v1895_v22 = vrot.slane %v1894_v9, 4  ;;  %v1880_v56 = vadd.f32 %v1879_v6, %v1878_v2 }
 0x269   :  { %v3308_v44 = vpop.eup %3307  ;;  %3160 = vmatprep.mubr.msk.f32.mxu0 %vm1516_vm8, %v1969_v57  ;;  %v1937_v32 = vsub.f32 2.0, %v1921_v48  ;;  %v4576_v15 = vadd.f32 %v1863_v13, %v1862_v0  ;;  %v1888_v10 = vrot.slane %v1887_v28, 2  ;;  %v1972_v14 = vmul.f32 %v4318_v11, %v1952_v36 }
 0x26a   :  { %v3310_v29 = vpop.eup %3309  ;;  %v1922_v41 = vmul.f32 %v3308_v44, %v4523_v55  ;;  %v1872_v45 = vrot.slane %v1871_v20, 1  ;;  %v1896_v60 = vadd.f32 %v1895_v22, %v1894_v9  ;;  %v1881_v19 = vrot.slane %v1880_v56, 1 }
 0x26b   :  { %v3312_v39 = vpop.eup %3311  ;;  %v1953_v49 = vmul.f32 %v3306_v37, %v1937_v32  ;;  %v1923_v63 = vmul.f32 %v3310_v29, %v4529_v50  ;;  %3319 = vrcp.f32 %v4576_v15  ;;  %v1889_v11 = vadd.f32 %v1888_v10, %v1887_v28 }
 0x26c   :  { %v3314_v51 = vpop.eup %3313  ;;  %3161 = vmatmul.mubr.msk.f32.gmra.mxu0 %vm1516_vm8, %v1970_v35  ;;  %v1938_v27 = vsub.f32 2.0, %v1922_v41  ;;  %v1924_v58 = vmul.f32 %v3312_v39, %v4536_v31  ;;  %v1873_v2 = vadd.f32 %v1872_v45, %v1871_v20  ;;  %v1897_v50 = vrot.slane %v1896_v60, 2 }
 0x26d   :  { %3163 = vmatprep.mubr.msk.f32.mxu0 %vm1516_vm8, %v1971_v53  ;;  %v1973_v55 = vmul.f32 %v4330_v16, %v1953_v49  ;;  %v1939_v4 = vsub.f32 2.0, %v1923_v63  ;;  %v1974_v9 = vmul.f32 %v4332_v18, %v1953_v49  ;;  %v1925_v31 = vmul.f32 %v3314_v51, %v4543_v42 }
 0x26e   :  { %v1954_v30 = vmul.f32 %v3308_v44, %v1938_v27  ;;  %v1940_v37 = vsub.f32 2.0, %v1924_v58  ;;  %3321 = vrcp.f32 %v1873_v2  ;;  %v1882_v16 = vadd.f32 %v1881_v19, %v1880_v56 }
 0x26f   :  { %v3316_v0 = vpop.eup %3315  ;;  %v1955_v36 = vmul.f32 %v3310_v29, %v1939_v4  ;;  %v1890_v47 = vrot.slane %v1889_v11, 1  ;;  %v1898_v13 = vadd.f32 %v1897_v50, %v1896_v60  ;;  %v1941_v35 = vsub.f32 2.0, %v1925_v31 }
 0x270   :  { %3164 = vmatmul.mubr.msk.f32.gmra.mxu0 %vm1516_vm8, %v1972_v14  ;;  %v1975_v57 = vmul.f32 %v4344_v59, %v1954_v30  ;;  %v1976_v6 = vmul.f32 %v4354_v38, %v1954_v30  ;;  %v1956_v28 = vmul.f32 %v3312_v39, %v1940_v37  ;;  %v1926_v18 = vmul.f32 %v3316_v0, %v4553_v33 }
 0x271   :  { %3166 = vmatprep.mubr.msk.f32.mxu0 %vm1516_vm8, %v1973_v55  ;;  %v1977_v42 = vmul.f32 %v4370_v52, %v1955_v36  ;;  %3323 = vrcp.f32 %v1882_v16  ;;  %v1891_v53 = vadd.f32 %v1890_v47, %v1889_v11  ;;  %v1899_v59 = vrot.slane %v1898_v13, 1 }
 0x272   :  { %v3318_v48 = vpop.eup %3317  ;;  %v1978_v20 = vmul.f32 %v4376_v5, %v1955_v36  ;;  %v1979_v22 = vmul.f32 %v4380_v54, %v1956_v28  ;;  %v1957_v44 = vmul.f32 %v3314_v51, %v1941_v35  ;;  %v1942_v38 = vsub.f32 2.0, %v1926_v18  ;;  %v2354_v36 = vpop.permute.xlu1 %2353 }
 0x273   :  { %v1927_v33 = vmul.f32 %v3318_v48, %v4562_v26  ;;  %3325 = vrcp.f32 %v1891_v53  ;;  %v1900_v56 = vadd.f32 %v1899_v59, %v1898_v13  ;;  %v1980_v52 = vmul.f32 %v4386_v25, %v1956_v28 }
 0x274   :  { %3167 = vmatmul.mubr.msk.f32.gmra.mxu0 %vm1516_vm8, %v1974_v9  ;;  %v1981_v10 = vmul.f32 %v4415_v3, %v1957_v44  ;;  %v1958_v5 = vmul.f32 %v3316_v0, %v1942_v38  ;;  %v1982_v26 = vmul.f32 %v4418_v24, %v1957_v44 }
 0x275   :  { %3169 = vmatprep.mubr.msk.f32.mxu0 %vm1516_vm8, %v1975_v57  ;;  %v1943_v54 = vsub.f32 2.0, %v1927_v33  ;;  %3327 = vrcp.f32 %v1900_v56  ;;  %v2352_v57 = vpop.permute.xlu0 %2351 }
 0x276   :  { %v1983_v45 = vmul.f32 %v4427_v1, %v1958_v5  ;;  %v1984_v49 = vmul.f32 %v4431_v21, %v1958_v5  ;;  %v4652_v47 = vpop.permute.xlu1 %2393 }
 0x277   :  { %v1959_v39 = vmul.f32 %v3318_v48, %v1943_v54 }
 0x278   :  { %3170 = vmatmul.mubr.msk.f32.gmra.mxu0 %vm1516_vm8, %v1976_v6  ;;  %v3320_v32 = vpop.eup %3319 }
 0x279   :  { %3172 = vmatprep.mubr.msk.f32.mxu0 %vm1516_vm8, %v1977_v42  ;;  %v1928_v41 = vmul.f32 %v3320_v32, %v4576_v15  ;;  %v1985_v15 = vmul.f32 %v4446_v61, %v1959_v39  ;;  %v1986_v1 = vmul.f32 %v4448_v40, %v1959_v39 }
 0x27a   :  { %v2358_v13 = vpop.permute.xlu1 %2357 }
 0x27b   :  { %v3322_v29 = vpop.eup %3321  ;;  %v1944_v25 = vsub.f32 2.0, %v1928_v41 }
 0x27c   :  { %3173 = vmatmul.mubr.msk.f32.gmra.mxu0 %vm1516_vm8, %v1978_v20  ;;  %v1929_v14 = vmul.f32 %v3322_v29, %v1873_v2 }
 0x27d   :  { %3175 = vmatprep.mubr.msk.f32.mxu0 %vm1516_vm8, %v1979_v22  ;;  %v1960_v63 = vmul.f32 %v3320_v32, %v1944_v25 }
 0x27e   :  { %v3324_v3 = vpop.eup %3323  ;;  %v1945_v60 = vsub.f32 2.0, %v1929_v14  ;;  %v4656_v28 = vpop.permute.xlu1 %2397 }
 0x27f   :  { %v1930_v51 = vmul.f32 %v3324_v3, %v1882_v16  ;;  %v1987_v27 = vmul.f32 %v4463_v7, %v1960_v63  ;;  %v1988_v61 = vmul.f32 %v4468_v8, %v1960_v63  ;;  %v4650_v16 = vpop.permute.xlu0 %2391 }
 0x280   :  { %3176 = vmatmul.mubr.msk.f32.gmra.mxu0 %vm1516_vm8, %v1980_v52  ;;  %v3326_v24 = vpop.eup %3325  ;;  %v1961_v58 = vmul.f32 %v3322_v29, %v1945_v60 }
 0x281   :  { %3178 = vmatprep.mubr.msk.f32.mxu0 %vm1516_vm8, %v1981_v10  ;;  %v1946_v2 = vsub.f32 2.0, %v1930_v51  ;;  %v1931_v55 = vmul.f32 %v3326_v24, %v1891_v53 }
 0x282   :  { %v3328_v21 = vpop.eup %3327  ;;  %v1989_v4 = vmul.f32 %v4472_v34, %v1961_v58  ;;  %v1990_v40 = vmul.f32 %v4478_v17, %v1961_v58  ;;  %v2362_v18 = vpop.permute.xlu1 %2361 }
 0x283   :  { %v1962_v19 = vmul.f32 %v3324_v3, %v1946_v2  ;;  %v1947_v11 = vsub.f32 2.0, %v1931_v55  ;;  %v1932_v30 = vmul.f32 %v3328_v21, %v1900_v56  ;;  %v2356_v48 = vpop.permute.xlu0 %2355 }
 0x284   :  { %3179 = vmatmul.mubr.msk.f32.gmra.mxu0 %vm1516_vm8, %v1982_v26 }
 0x285   :  { %3181 = vmatprep.mubr.msk.f32.mxu0 %vm1516_vm8, %v1983_v45  ;;  %v1991_v7 = vmul.f32 %v4497_v23, %v1962_v19  ;;  %v1963_v0 = vmul.f32 %v3326_v24, %v1947_v11  ;;  %v1948_v50 = vsub.f32 2.0, %v1932_v30  ;;  %v1992_v8 = vmul.f32 %v4502_v46, %v1962_v19  ;;  %v4753_v23 = vld [vmem:[#allocation17_spill] sm:$0xff] }
 0x286   :  { %v2626_v46 = vld [vmem:[%s4742_s6 + $0x18] sm:$0xff]  ;;  %v4660_v53 = vpop.permute.xlu1 %2401 }
 0x287   :  { %v1993_v34 = vmul.f32 %v4520_v12, %v1963_v0  ;;  %v1964_v9 = vmul.f32 %v3328_v21, %v1948_v50  ;;  %v1994_v37 = vmul.f32 %v4525_v62, %v1963_v0  ;;  %3202 = vmatprep.subr.mxu1 %v2626_v46  ;;  %v2625_v12 = vld [vmem:[%s4742_s6 + $0x10] sm:$0xff]  ;;  %v2624_v62 = vld [vmem:[%s4742_s6 + $0x8] sm:$0xff]  ;;  %v4654_v6 = vpop.permute.xlu0 %2395 }
 0x288   :  { %3182 = vmatmul.mubr.msk.f32.gmra.mxu0 %vm1516_vm8, %v1984_v49  ;;  %3203 = vmatpush3.msra.mxu1 %v2626_v46 }
 0x289   :  { %3184 = vmatprep.mubr.msk.f32.mxu0 %vm1516_vm8, %v1985_v15  ;;  %v1995_v17 = vmul.f32 %v4531_v43, %v1964_v9  ;;  %v1996_v31 = vmul.f32 %v4753_v23, %v1964_v9  ;;  %3204 = vmatprep.subr.mxu1 %v2625_v12  ;;  %v2623_v43 = vld [vmem:[%s4742_s6] sm:$0xff]  ;;  %s3450_s6 = smov [#allocation10]  }
 0x28a   :  { %3205 = vmatpush3.msra.mxu1 %v2625_v12  ;;  %v2366_v20 = vpop.permute.xlu1 %2365  ;;  %s2793_s26 = sshll.u32 %s3450_s6, 4  ;;  %s2794_s26 = int_to_ptr.vmem [resolvable:$true] %s2793_s26 }
 0x28b   :  { %3206 = vmatprep.subr.mxu1 %v2624_v62  ;;  %v2360_v35 = vpop.permute.xlu0 %2359  ;;  %s3413_s27 = scalar_lea.vmem %s2794_s26, 256  ;;  %p3418_p7 = scmp.lt.s32.totalorder %s2794_s26, %s2794_s26 }
 0x28c   :  { %3185 = vmatmul.mubr.msk.f32.gmra.mxu0 %vm1516_vm8, %v1986_v1  ;;  %3207 = vmatpush3.msra.mxu1 %v2624_v62  ;;  %p3414_p6 = scmp.ne.s32.totalorder %s2794_s26, %s3413_s27  ;;  %p3419_p8 = scmp.lt.s32.totalorder %s3413_s27, %s3413_s27 }
 0x28d   :  { %3187 = vmatprep.mubr.msk.f32.mxu0 %vm1516_vm8, %v1987_v27  ;;  %3208 = vmatprep.subr.mxu1 %v2623_v43 }
 0x28e   :  { %3209 = vmatpush3.msra.mxu1 %v2623_v43  ;;  %v4664_v38 = vpop.permute.xlu1 %2405  ;;  %p3420_p9 = por %p3419_p8, %p3418_p7 }
 0x28f   :  { %v4658_v42 = vpop.permute.xlu0 %2399 }
 0x290   :  { %3188 = vmatmul.mubr.msk.f32.gmra.mxu0 %vm1516_vm8, %v1988_v61  ;;  %p3421_p10 = pnand %p3420_p9, %p3414_p6 }
 0x291   :  { %3190 = vmatprep.mubr.msk.f32.mxu0 %vm1516_vm8, %v1989_v4 }
 0x292   :  { %v2370_v25 = vpop.permute.xlu1 %2369 }
 0x293   :  { %v2364_v59 = vpop.permute.xlu0 %2363 }
 0x294   :  { %3191 = vmatmul.mubr.msk.f32.gmra.mxu0 %vm1516_vm8, %v1990_v40 }
 0x295   :  { %3193 = vmatprep.mubr.msk.f32.mxu0 %vm1516_vm8, %v1991_v7 }
 0x296   :  { %v2374_v4 = vpop.permute.xlu1 %2373 }
 0x297   :  { %v4662_v32 = vpop.permute.xlu0 %2403 }
 0x298   :  { %3194 = vmatmul.mubr.msk.f32.gmra.mxu0 %vm1516_vm8, %v1992_v8 }
 0x299   :  { %3196 = vmatprep.mubr.msk.f32.mxu0 %vm1516_vm8, %v1993_v34 }
 0x29b   :  { %v2368_v54 = vpop.permute.xlu0 %2367 }
 0x29c   :  { %3197 = vmatmul.mubr.msk.f32.gmra.mxu0 %vm1516_vm8, %v1994_v37 }
 0x29d   :  { %3199 = vmatprep.mubr.msk.f32.mxu0 %vm1516_vm8, %v1995_v17 }
 0x29f   :  { %v2372_v58 = vpop.permute.xlu0 %2371 }
 0x2a0   :  { %3200 = vmatmul.mubr.msk.f32.gmra.mxu0 %vm1516_vm8, %v1996_v31 }
 0x2a3   :  { %v2376_v37 = vpop.permute.xlu0 %2375 }
 0x323   :  { %v3156_v22 = vpop.f32.mrf.mxu0 }
 0x324   :  { %v2448_v29 = vmul.f32 %v3156_v22, %v2354_v36 }
 0x325   :  { %v2160_v44 = vpop.f32.mrf.mxu0 }
 0x326   :  { %v2447_v56 = vmul.f32 %v2352_v57, %v2160_v44  ;;  %v2480_v49 = vsel %vm130_vm0, %v2448_v29, 0.0  ;;  %v2378_v57 = vpop.permute.xlu1 %2377 }
 0x328   :  { %v3159_v33 = vpop.f32.mrf.mxu0  ;;  %v2479_v26 = vsel %vm130_vm0, %v2447_v56, 0.0 }
 0x329   :  { %v2450_v52 = vmul.f32 %v3159_v33, %v2358_v13  ;;  %v2481_v60 = vadd.f32 %v2480_v49, %v2479_v26 }
 0x32a   :  { %v2170_v10 = vpop.f32.mrf.mxu0 }
 0x32b   :  { %v2449_v5 = vmul.f32 %v2356_v48, %v2170_v10  ;;  %v2489_v14 = vsel %vm130_vm0, %v2450_v52, 0.0  ;;  %v2482_v19 = vrot.slane %v2481_v60, 4  ;;  %v2380_v10 = vpop.permute.xlu0 %2379 }
 0x32c   :  { %v3162_v41 = vpop.f32.mrf.mxu0 }
 0x32d   :  { %v2488_v45 = vsel %vm130_vm0, %v2449_v5, 0.0  ;;  %v2452_v39 = vmul.f32 %v3162_v41, %v2362_v18  ;;  %v2483_v17 = vadd.f32 %v2482_v19, %v2481_v60 }
 0x32e   :  { %v2180_v3 = vpop.f32.mrf.mxu0  ;;  %v2490_v15 = vadd.f32 %v2489_v14, %v2488_v45 }
 0x32f   :  { %v2451_v63 = vmul.f32 %v2360_v35, %v2180_v3  ;;  %v2498_v24 = vsel %vm130_vm0, %v2452_v39, 0.0  ;;  %v2382_v39 = vpop.permute.xlu1 %2381 }
 0x330   :  { %v3165_v51 = vpop.f32.mrf.mxu0  ;;  %v2491_v21 = vrot.slane %v2490_v15, 4 }
 0x331   :  { %v2497_v1 = vsel %vm130_vm0, %v2451_v63, 0.0  ;;  %v2454_v27 = vmul.f32 %v3165_v51, %v2366_v20 }
 0x332   :  { %v2499_v2 = vadd.f32 %v2498_v24, %v2497_v1  ;;  %v2190_v55 = vpop.f32.mrf.mxu0  ;;  %v2492_v34 = vadd.f32 %v2491_v21, %v2490_v15  ;;  %v2384_v21 = vpop.permute.xlu0 %2383 }
 0x333   :  { %v2453_v61 = vmul.f32 %v2364_v59, %v2190_v55  ;;  %v2507_v40 = vsel %vm130_vm0, %v2454_v27, 0.0  ;;  %v2484_v59 = vrot.slane %v2483_v17, 2 }
 0x334   :  { %v3168_v11 = vpop.f32.mrf.mxu0  ;;  %v2500_v30 = vrot.slane %v2499_v2, 4  ;;  %v2493_v35 = vrot.slane %v2492_v34, 2 }
 0x335   :  { %v2506_v7 = vsel %vm130_vm0, %v2453_v61, 0.0  ;;  %v2456_v0 = vmul.f32 %v3168_v11, %v2370_v25  ;;  %v2485_v25 = vadd.f32 %v2484_v59, %v2483_v17 }
 0x336   :  { %v2508_v50 = vadd.f32 %v2507_v40, %v2506_v7  ;;  %v2200_v8 = vpop.f32.mrf.mxu0  ;;  %v2501_v46 = vadd.f32 %v2500_v30, %v2499_v2  ;;  %v2494_v26 = vadd.f32 %v2493_v35, %v2492_v34 }
 0x337   :  { %v2455_v9 = vmul.f32 %v2368_v54, %v2200_v8  ;;  %v2516_v12 = vsel %vm130_vm0, %v2456_v0, 0.0  ;;  %v2486_v30 = vrot.slane %v2485_v25, 1 }
 0x338   :  { %v2509_v23 = vrot.slane %v2508_v50, 4  ;;  %v3171_v31 = vpop.f32.mrf.mxu0  ;;  %v2502_v44 = vrot.slane %v2501_v46, 2  ;;  %v2495_v2 = vrot.slane %v2494_v26, 1 }
 0x339   :  { %v2515_v62 = vsel %vm130_vm0, %v2455_v9, 0.0  ;;  %v2458_v43 = vmul.f32 %v3171_v31, %v2374_v4 }
 0x33a   :  { %v2510_v36 = vadd.f32 %v2509_v23, %v2508_v50  ;;  %v2517_v48 = vadd.f32 %v2516_v12, %v2515_v62  ;;  %v2210_v13 = vpop.f32.mrf.mxu0  ;;  %v2503_v15 = vadd.f32 %v2502_v44, %v2501_v46  ;;  %v2386_v50 = vpop.permute.xlu1 %2385  ;;  %v2496_v23 = vadd.f32 %v2495_v2, %v2494_v26 }
 0x33b   :  { %v2457_v18 = vmul.f32 %v2372_v58, %v2210_v13  ;;  %v2525_v33 = vsel %vm130_vm0, %v2458_v43, 0.0  ;;  %v2487_v43 = vadd.f32 %v2486_v30, %v2485_v25 }
 0x33c   :  { %v2518_v20 = vrot.slane %v2517_v48, 4  ;;  %v3174_v22 = vpop.f32.mrf.mxu0  ;;  %v2511_v29 = vrot.slane %v2510_v36, 2  ;;  %v2504_v40 = vrot.slane %v2503_v15, 1 }
 0x33d   :  { %v2524_v56 = vsel %vm130_vm0, %v2457_v18, 0.0  ;;  %v2460_v52 = vmul.f32 %v3174_v22, %v2378_v57 }
 0x33e   :  { %v2519_v5 = vadd.f32 %v2518_v20, %v2517_v48  ;;  %v2526_v54 = vadd.f32 %v2525_v33, %v2524_v56  ;;  %v2220_v41 = vpop.f32.mrf.mxu0  ;;  %v2512_v24 = vadd.f32 %v2511_v29, %v2510_v36  ;;  %v2505_v57 = vadd.f32 %v2504_v40, %v2503_v15  ;;  %v2388_v36 = vpop.permute.xlu0 %2387 }
 0x33f   :  { %v2459_v45 = vmul.f32 %v2376_v37, %v2220_v41  ;;  %v2534_v63 = vsel %vm130_vm0, %v2460_v52, 0.0  ;;  %v2648_v20 = vsel %vm655_vm1, %v2496_v23, %v2487_v43  ;;  %v2390_v44 = vpop.permute.xlu1 %2389 }
 0x340   :  { %v2520_v14 = vrot.slane %v2519_v5, 2  ;;  %v2527_v3 = vrot.slane %v2526_v54, 4  ;;  %v3177_v49 = vpop.f32.mrf.mxu0  ;;  %v2513_v8 = vrot.slane %v2512_v24, 1 }
 0x341   :  { %v2533_v60 = vsel %vm130_vm0, %v2459_v45, 0.0  ;;  %v2462_v51 = vmul.f32 %v3177_v49, %v2382_v39 }
 0x342   :  { %v2528_v1 = vadd.f32 %v2527_v3, %v2526_v54  ;;  %v2535_v27 = vadd.f32 %v2534_v63, %v2533_v60  ;;  %v2230_v58 = vpop.f32.mrf.mxu0  ;;  %v2521_v61 = vadd.f32 %v2520_v14, %v2519_v5  ;;  %v2514_v48 = vadd.f32 %v2513_v8, %v2512_v24 }
 0x343   :  { %v2461_v55 = vmul.f32 %v2380_v10, %v2230_v58  ;;  %v2543_v7 = vsel %vm130_vm0, %v2462_v51, 0.0  ;;  %v2649_v5 = vsel %vm657_vm2, %v2505_v57, %v2648_v20  ;;  %v2410_v43 = vpop.permute.xlu1 %2409 }
 0x344   :  { %v2529_v4 = vrot.slane %v2528_v1, 2  ;;  %v2536_v19 = vrot.slane %v2535_v27, 4  ;;  %v3180_v11 = vpop.f32.mrf.mxu0  ;;  %v2522_v31 = vrot.slane %v2521_v61, 1  ;;  %v2650_v25 = vsel %vm659_vm3, %v2514_v48, %v2649_v5 }
 0x345   :  { %v2542_v0 = vsel %vm130_vm0, %v2461_v55, 0.0  ;;  %v2464_v3 = vmul.f32 %v3180_v11, %v2386_v50 }
 0x346   :  { %v2530_v34 = vadd.f32 %v2529_v4, %v2528_v1  ;;  %v2537_v9 = vadd.f32 %v2536_v19, %v2535_v27  ;;  %v2544_v37 = vadd.f32 %v2543_v7, %v2542_v0  ;;  %v2240_v17 = vpop.f32.mrf.mxu0  ;;  %v2523_v33 = vadd.f32 %v2522_v31, %v2521_v61 }
 0x347   :  { %v2463_v10 = vmul.f32 %v2384_v21, %v2240_v17  ;;  %v2552_v4 = vsel %vm130_vm0, %v2464_v3, 0.0 }
 0x348   :  { %v2538_v46 = vrot.slane %v2537_v9, 2  ;;  %v2545_v12 = vrot.slane %v2544_v37, 4  ;;  %v3183_v62 = vpop.f32.mrf.mxu0  ;;  %v2531_v13 = vrot.slane %v2530_v34, 1  ;;  %v2651_v24 = vsel %vm661_vm4, %v2523_v33, %v2650_v25 }
 0x349   :  { %v2466_v54 = vmul.f32 %v3183_v62, %v2390_v44  ;;  %v2551_v60 = vsel %vm130_vm0, %v2463_v10, 0.0 }
 0x34a   :  { %v2539_v35 = vadd.f32 %v2538_v46, %v2537_v9  ;;  %v2546_v18 = vadd.f32 %v2545_v12, %v2544_v37  ;;  %v2250_v59 = vpop.f32.mrf.mxu0  ;;  %v2532_v26 = vadd.f32 %v2531_v13, %v2530_v34  ;;  %v2553_v30 = vadd.f32 %v2552_v4, %v2551_v60 }
 0x34b   :  { %v2465_v22 = vmul.f32 %v2388_v36, %v2250_v59  ;;  %v2561_v1 = vsel %vm130_vm0, %v2466_v54, 0.0  ;;  %v2414_v54 = vpop.permute.xlu1 %2413 }
 0x34c   :  { %v2540_v56 = vrot.slane %v2539_v35, 1  ;;  %v2547_v52 = vrot.slane %v2546_v18, 2  ;;  %v3186_v29 = vpop.f32.mrf.mxu0  ;;  %v2554_v17 = vrot.slane %v2553_v30, 4 }
 0x34d   :  { %v2468_v41 = vmul.f32 %v3186_v29, %v4652_v47  ;;  %v2560_v49 = vsel %vm130_vm0, %v2465_v22, 0.0 }
 0x34e   :  { %v2548_v45 = vadd.f32 %v2547_v52, %v2546_v18  ;;  %v2260_v39 = vpop.f32.mrf.mxu0  ;;  %v2541_v14 = vadd.f32 %v2540_v56, %v2539_v35  ;;  %v2562_v2 = vadd.f32 %v2561_v1, %v2560_v49  ;;  %v2408_v35 = vpop.permute.xlu0 %2407  ;;  %v2555_v18 = vadd.f32 %v2554_v17, %v2553_v30 }
 0x34f   :  { %v2467_v15 = vmul.f32 %v4650_v16, %v2260_v39  ;;  %v2570_v47 = vsel %vm130_vm0, %v2468_v41, 0.0  ;;  %v2652_v16 = vsel %vm663_vm5, %v2532_v26, %v2651_v24 }
 0x350   :  { %v2549_v63 = vrot.slane %v2548_v45, 1  ;;  %v3189_v51 = vpop.f32.mrf.mxu0  ;;  %v2653_v11 = vsel %vm665_vm6, %v2541_v14, %v2652_v16  ;;  %v2563_v8 = vrot.slane %v2562_v2, 4  ;;  %v2556_v41 = vrot.slane %v2555_v18, 2 }
 0x351   :  { %v2569_v27 = vsel %vm130_vm0, %v2467_v15, 0.0  ;;  %v2470_v58 = vmul.f32 %v3189_v51, %v4656_v28 }
 0x352   :  { %v2571_v55 = vadd.f32 %v2570_v47, %v2569_v27  ;;  %v2270_v21 = vpop.f32.mrf.mxu0  ;;  %v2550_v61 = vadd.f32 %v2549_v63, %v2548_v45  ;;  %v2564_v57 = vadd.f32 %v2563_v8, %v2562_v2  ;;  %v2412_v49 = vpop.permute.xlu0 %2411  ;;  %v2557_v47 = vadd.f32 %v2556_v41, %v2555_v18 }
 0x353   :  { %v2469_v19 = vmul.f32 %v4654_v6, %v2270_v21  ;;  %v2579_v0 = vsel %vm130_vm0, %v2470_v58, 0.0 }
 0x354   :  { %v3192_v40 = vpop.f32.mrf.mxu0  ;;  %v2654_v7 = vsel %vm667_vm7, %v2550_v61, %v2653_v11  ;;  %v2572_v37 = vrot.slane %v2571_v55, 4  ;;  %v2565_v56 = vrot.slane %v2564_v57, 2 }
 0x355   :  { %v2578_v28 = vsel %vm130_vm0, %v2469_v19, 0.0  ;;  %v2472_v50 = vmul.f32 %v3192_v40, %v4660_v53  ;;  %3210 = vmatprep.mubr.msk.f32.mxu1 %vm130_vm0, %v2654_v7  ;;  %v2558_v40 = vrot.slane %v2557_v47, 1 }
 0x356   :  { %v2580_v34 = vadd.f32 %v2579_v0, %v2578_v28  ;;  %v2280_v9 = vpop.f32.mrf.mxu0  ;;  %v2573_v48 = vadd.f32 %v2572_v37, %v2571_v55  ;;  %v2566_v15 = vadd.f32 %v2565_v56, %v2564_v57 }
 0x357   :  { %v2471_v6 = vmul.f32 %v4658_v42, %v2280_v9  ;;  %v2588_v46 = vsel %vm130_vm0, %v2472_v50, 0.0  ;;  %v2559_v17 = vadd.f32 %v2558_v40, %v2557_v47 }
 0x358   :  { %v2581_v23 = vrot.slane %v2580_v34, 4  ;;  %v3195_v31 = vpop.f32.mrf.mxu0  ;;  %v2574_v29 = vrot.slane %v2573_v48, 2  ;;  %v2567_v16 = vrot.slane %v2566_v15, 1 }
 0x359   :  { %v2587_v12 = vsel %vm130_vm0, %v2471_v6, 0.0  ;;  %v2474_v62 = vmul.f32 %v3195_v31, %v4664_v38 }
 0x35a   :  { %v2589_v53 = vadd.f32 %v2588_v46, %v2587_v12  ;;  %v2290_v36 = vpop.f32.mrf.mxu0  ;;  %v2582_v59 = vadd.f32 %v2581_v23, %v2580_v34  ;;  %v2575_v24 = vadd.f32 %v2574_v29, %v2573_v48  ;;  %v2568_v8 = vadd.f32 %v2567_v16, %v2566_v15 }
 0x35b   :  { %v2473_v13 = vmul.f32 %v4662_v32, %v2290_v36  ;;  %v2597_v22 = vsel %vm130_vm0, %v2474_v62, 0.0 }
 0x35c   :  { %v2590_v42 = vrot.slane %v2589_v53, 4  ;;  %v3198_v20 = vpop.f32.mrf.mxu0  ;;  %v2583_v26 = vrot.slane %v2582_v59, 2  ;;  %v2576_v30 = vrot.slane %v2575_v24, 1  ;;  %v2655_v62 = vsel %vm655_vm1, %v2568_v8, %v2559_v17 }
 0x35d   :  { %v2596_v44 = vsel %vm130_vm0, %v2473_v13, 0.0  ;;  %v2476_v33 = vmul.f32 %v3198_v20, %v2410_v43 }
 0x35e   :  { %v2591_v52 = vadd.f32 %v2590_v42, %v2589_v53  ;;  %v2598_v38 = vadd.f32 %v2597_v22, %v2596_v44  ;;  %v2300_v10 = vpop.f32.mrf.mxu0  ;;  %v2584_v27 = vadd.f32 %v2583_v26, %v2582_v59  ;;  %v2577_v6 = vadd.f32 %v2576_v30, %v2575_v24  ;;  %v2907_v22 = vld [vmem:[#allocation7 + $0x1] ss:$0 sm:$0xff] }
 0x35f   :  { %v2475_v5 = vmul.f32 %v2408_v35, %v2300_v10  ;;  %v2606_v25 = vsel %vm130_vm0, %v2476_v33, 0.0 }
 0x360   :  { %v2599_v32 = vrot.slane %v2598_v38, 4  ;;  %v3201_v45 = vpop.f32.mrf.mxu0  ;;  %v2592_v39 = vrot.slane %v2591_v52, 2  ;;  %v2585_v7 = vrot.slane %v2584_v27, 1  ;;  %v2656_v53 = vsel %vm657_vm2, %v2577_v6, %v2655_v62 }
 0x361   :  { %v2605_v14 = vsel %vm130_vm0, %v2475_v5, 0.0  ;;  %v2478_v3 = vmul.f32 %v3201_v45, %v2414_v54  ;;  %v4755_v5 = vld [vmem:[#allocation16_spill] sm:$0xff] }
 0x362   :  { %v2600_v63 = vadd.f32 %v2599_v32, %v2598_v38  ;;  %v2607_v60 = vadd.f32 %v2606_v25, %v2605_v14  ;;  %v2310_v51 = vpop.f32.mrf.mxu0  ;;  %v2593_v55 = vadd.f32 %v2592_v39, %v2591_v52  ;;  %v2586_v23 = vadd.f32 %v2585_v7, %v2584_v27  ;;  %v4754_v38 = vld [vmem:[#allocation15_spill] sm:$0xff] }
 0x363   :  { %v2477_v1 = vmul.f32 %v2412_v49, %v2310_v51  ;;  %v2615_v21 = vsel %vm130_vm0, %v2478_v3, 0.0 }
 0x364   :  { %v2601_v58 = vrot.slane %v2600_v63, 2  ;;  %v2608_v2 = vrot.slane %v2607_v60, 4  ;;  %v2594_v50 = vrot.slane %v2593_v55, 1  ;;  %v2657_v48 = vsel %vm659_vm3, %v2586_v23, %v2656_v53 }
 0x365   :  { %v2614_v61 = vsel %vm130_vm0, %v2477_v1, 0.0 }
 0x366   :  { %v2602_v4 = vadd.f32 %v2601_v58, %v2600_v63  ;;  %v2609_v19 = vadd.f32 %v2608_v2, %v2607_v60  ;;  %v2616_v11 = vadd.f32 %v2615_v21, %v2614_v61  ;;  %v2595_v12 = vadd.f32 %v2594_v50, %v2593_v55  ;;  %v2910_v2 = vld [vmem:[#allocation7 + $0x2] ss:$0 sm:$0xff]  ;;  %v2911_v21 = vld [vmem:[#allocation7 + $0x3] ss:$0 sm:$0xff] }
 0x368   :  { %v2610_v0 = vrot.slane %v2609_v19, 2  ;;  %v2617_v28 = vrot.slane %v2616_v11, 4  ;;  %v2603_v34 = vrot.slane %v2602_v4, 1  ;;  %v2658_v35 = vsel %vm661_vm4, %v2595_v12, %v2657_v48 }
 0x36a   :  { %v2611_v9 = vadd.f32 %v2610_v0, %v2609_v19  ;;  %v2618_v37 = vadd.f32 %v2617_v28, %v2616_v11  ;;  %v2604_v43 = vadd.f32 %v2603_v34, %v2602_v4 }
 0x36c   :  { %v2612_v31 = vrot.slane %v2611_v9, 1  ;;  %v2619_v46 = vrot.slane %v2618_v37, 2  ;;  %v2659_v59 = vsel %vm663_vm5, %v2604_v43, %v2658_v35 }
 0x36e   :  { %v2620_v57 = vadd.f32 %v2619_v46, %v2618_v37  ;;  %v2613_v36 = vadd.f32 %v2612_v31, %v2611_v9 }
 0x370   :  { %v2621_v13 = vrot.slane %v2620_v57, 1  ;;  %v2660_v42 = vsel %vm665_vm6, %v2613_v36, %v2659_v59 }
 0x372   :  { %v2622_v18 = vadd.f32 %v2621_v13, %v2620_v57 }
 0x374   :  { %v2661_v20 = vsel %vm667_vm7, %v2622_v18, %v2660_v42 }
 0x375   :  { %3211 = vmatmul.mubr.msk.f32.vlgmr.msra.gmra.mxu1 %vm130_vm0, %v2661_v20 }
 0x435   :  { %v3212_v44 = vpop.f32.mrf.mxu1 }
 0x436   :  { %v2738_v33 = vadd.f32 %v3212_v44, %v2907_v22 }
 0x437   :  { %v2732_v56 = vpop.f32.mrf.mxu1 }
 0x438   :  { %v2733_v52 = vadd.f32 %v2907_v22, %v2732_v56  ;;  %v2744_v10 = vadd.f32 %v2738_v33, %v4754_v38 }
 0x43a   :  { %v2748_v29 = vsel %vm130_vm0, %v2744_v10, 0.0  ;;  %v2743_v54 = vadd.f32 %v2733_v52, %v4755_v5 }
 0x43b   :  { %2749 = vadd.xlane.f32.xlu1 %v2748_v29 }
 0x43c   :  { %v2745_v41 = vsel %vm130_vm0, %v2743_v54, 0.0 }
 0x43d   :  { %2746 = vadd.xlane.f32.xlu0 %v2745_v41 }
 0x4c4   :  { %v2750_v26 = vpop.xlane.xlu1 %2749 }
 0x4c5   :  { %v2753_v32 = vmul.f32 0.03125, %v2750_v26 }
 0x4c6   :  { %v2747_v45 = vpop.xlane.xlu0 %2746 }
 0x4c7   :  { %v2752_v39 = vmul.f32 0.03125, %v2747_v45  ;;  %v2755_v25 = vsub.f32 %v2744_v10, %v2753_v32 }
 0x4c9   :  { %v2754_v14 = vsub.f32 %v2743_v54, %v2752_v39  ;;  %v2757_v15 = vmul.f32 %v2755_v25, %v2755_v25 }
 0x4cb   :  { %v2756_v3 = vmul.f32 %v2754_v14, %v2754_v14  ;;  %v2761_v63 = vsel %vm130_vm0, %v2757_v15, 0.0 }
 0x4cd   :  { %v2758_v49 = vsel %vm130_vm0, %v2756_v3, 0.0 }
 0x4ce   :  { %2759 = vadd.xlane.f32.xlu0 %v2758_v49 }
 0x4d2   :  { %2762 = vadd.xlane.f32.xlu0 %v2761_v63 }
 0x557   :  { %v2760_v60 = vpop.xlane.xlu0 %2759 }
 0x558   :  { %v2764_v51 = vmul.f32 0.03125, %v2760_v60 }
 0x55a   :  { %v2766_v24 = vadd.f32 1e-05, %v2764_v51 }
 0x55b   :  { %v2763_v1 = vpop.xlane.xlu0 %2762 }
 0x55c   :  { %3329 = vrsqrt.f32 %v2766_v24  ;;  %v2765_v47 = vmul.f32 0.03125, %v2763_v1 }
 0x55e   :  { %v2767_v27 = vadd.f32 1e-05, %v2765_v47 }
 0x560   :  { %3331 = vrsqrt.f32 %v2767_v27 }
 0x569   :  { %v3330_v58 = vpop.eup %3329 }
 0x56a   :  { %v2770_v55 = vmul.f32 %v3330_v58, %v2754_v14 }
 0x56c   :  { %v2777_v61 = vmul.f32 %v2910_v2, %v2770_v55 }
 0x56d   :  { %v3332_v16 = vpop.eup %3331 }
 0x56e   :  { %v2771_v4 = vmul.f32 %v3332_v16, %v2755_v25  ;;  %v2784_v19 = vadd.f32 %v2911_v21, %v2777_v61 }
 0x570   :  { %v2778_v11 = vmul.f32 %v2910_v2, %v2771_v4  ;;  %2786 = vst.msk [vmem:[#allocation10] sm:$0xff] %vm130_vm0, %v2784_v19 }
 0x572   :  { %v2785_v30 = vadd.f32 %v2911_v21, %v2778_v11 }
 0x574   :  { %2787 = vst.msk [vmem:[#allocation10 + $0x8] sm:$0xff] %vm130_vm0, %v2785_v30 }
 0x575   :  { %3424 = shalt.err (!%p3421_p10)
}
 0x576   :  { %2799 = dma.vmem_to_hbm [thread:$0]  %s2794_s26, 256, %s4746_s10, [#allocation4], %s3443_s18, %s3443_s18, %s3444_s19  }
 0x577   :  { %3439 = dma.done.wait [#allocation4], 256  }
 0x578   :  { %3440 = vsyncadd [#allocation4], 4294967040 }
 0x579   :  { %2803 = vsyncpa [#allocation3], 1 }
 0x57a   :  { %2804 = vsyncpa [#allocation6], 1 }
 0x57b   :  { %2805 = vsyncpa [#allocation9], 1 }
 0x57c   :  { %2806 = vsyncpa [#allocation4], 1 }

</bundles_post_ra>
